<compile_context>
chip_gen: v5e
topology: v5e:2x2
jax: 0.10.0
libtpu: 0.0.40
codegen_flags: <defaults>
</compile_context>

<pallas_src>
import functools

import jax
import jax.numpy as jnp
import numpy as np
from jax.experimental import pallas as pl
from jax.experimental.pallas import tpu as pltpu


# ----------------------------------------------------------------------------- kernel

def _clfr_fused_kernel(xh_ref, xm_ref, w_ref, b_ref, oh_ref, om_ref,
                       *, batch, c, cm, n_h, n_m, n_hp, n_mp):
    """Fused CLFR forward.

    xh_ref: (B, C,  Nh_pad)    high-level input, spatial on lanes (padded to 128 multiple)
    xm_ref: (B, Cm, 4*Nm_pad)  mid-level input, four 2x2-window positions as four
                               contiguous tile-aligned lane slabs of width Nm_pad
    w_ref : (4C, C)  bf16      packed folded conv weights [wh1; wh2; wm1(pad); wm2(pad)]
    b_ref : (4C, 1)  f32       packed folded biases
    oh_ref: (B, C, Nh_pad)     f_refine_h (also used to stash f_h between passes)
    om_ref: (B, C, Nm_pad)     f_refine_m (also used to stash f_m between passes)
    """
    f32, bf16 = jnp.float32, jnp.bfloat16

    # Unpack the folded params once (tiny arrays, already bf16 for the weights).
    w = w_ref[...]
    bias = b_ref[...]
    wh1, wh2 = w[0:c, :], w[c:2 * c, :]
    wm1, wm2 = w[2 * c:2 * c + cm, 0:cm], w[3 * c:4 * c, 0:cm]
    bh1, bh2 = bias[0:c], bias[c:2 * c]
    bm1, bm2 = bias[2 * c:2 * c + cm], bias[3 * c:4 * c]

    def leaky(y):                              # LeakyReLU(0.2) as vmul + vmax
        return jnp.maximum(y, 0.2 * y)

    def conv_bn_lrelu(x, wk, bk):              # 1x1 conv = MXU matmul (bf16 in, f32 acc)
        return leaky(jnp.dot(wk, x.astype(bf16), preferred_element_type=f32) + bk)

    # Lane-validity masks, only materialised when the wrapper padded N up to 128.
    if n_hp > n_h:
        mask_h = (jax.lax.broadcasted_iota(jnp.int32, (1, n_hp), 1) < n_h).astype(f32)
    if n_mp > n_m:
        mask_m = (jax.lax.broadcasted_iota(jnp.int32, (1, n_mp), 1) < n_m).astype(f32)

    dn_t = (((0,), (0,)), ((), ()))            # contract channel dim of both: A^T @ B

    # --- pass 1: convs + MaxPool2d(2); stash f_h / f_m in the output refs and accumulate
    #             the squared Frobenius norm of matrix_hm (matrices are discarded).
    ss_m = jnp.zeros((1, 1), f32)
    for b in range(batch):
        fh = conv_bn_lrelu(conv_bn_lrelu(xh_ref[b], wh1, bh1), wh2, bh2)         # (C, Nh)
        ym = conv_bn_lrelu(conv_bn_lrelu(xm_ref[b], wm1, bm1), wm2, bm2)         # (C, 4*Nm)
        fm = jnp.maximum(jnp.maximum(ym[:, 0:n_mp], ym[:, n_mp:2 * n_mp]),
                         jnp.maximum(ym[:, 2 * n_mp:3 * n_mp], ym[:, 3 * n_mp:4 * n_mp]))
        if n_hp > n_h:                         # zero padded lanes (conv bias made them != 0)
            fh = fh * mask_h
        if n_mp > n_m:
            fm = fm * mask_m
        oh_ref[b] = fh
        om_ref[b] = fm
        mhm = jax.lax.dot_general(fm.astype(bf16), fh.astype(bf16), dn_t,
                                  preferred_element_type=f32)                     # (Nm, Nh)
        ss_m = ss_m + jnp.sum(mhm * mhm, keepdims=True)
    inv_m = jax.lax.rsqrt(ss_m)                # no epsilon: matches torch.norm semantics

    # --- pass 2: recompute matrix_hm, tanh-normalise, f_refine_h -> oh_ref, accumulate
    #             the squared Frobenius norm of matrix_mh.
    ss_h = jnp.zeros((1, 1), f32)
    for b in range(batch):
        fh = oh_ref[b]
        fm16 = om_ref[b].astype(bf16)
        mhm = jax.lax.dot_general(fm16, fh.astype(bf16), dn_t, preferred_element_type=f32)
        mhm = jnp.tanh(mhm * inv_m)
        frh = jnp.dot(fm16, mhm.astype(bf16), preferred_element_type=f32) + fh    # (C, Nh)
        oh_ref[b] = frh
        mmh = jax.lax.dot_general(frh.astype(bf16), fm16, dn_t,
                                  preferred_element_type=f32)                      # (Nh, Nm)
        ss_h = ss_h + jnp.sum(mmh * mmh, keepdims=True)
    inv_h = jax.lax.rsqrt(ss_h)

    # --- pass 3: recompute matrix_mh, tanh-normalise, f_refine_m -> om_ref.
    for b in range(batch):
        frh16 = oh_ref[b].astype(bf16)
        fm = om_ref[b]
        mmh = jax.lax.dot_general(frh16, fm.astype(bf16), dn_t, preferred_element_type=f32)
        mmh = jnp.tanh(mmh * inv_h)
        om_ref[b] = jnp.dot(frh16, mmh.astype(bf16), preferred_element_type=f32) + fm


# ----------------------------------------------------------------------------- wrapper

def _ceil_to(x, m):
    return ((x + m - 1) // m) * m


def _pack_params(params, C, Cm):
    """Pack the 8 folded conv params into one bf16 weight buffer + one f32 bias buffer."""
    (wh1, bh1), (wh2, bh2) = params['h1'], params['h2']
    (wm1, bm1), (wm2, bm2) = params['m1'], params['m2']
    wpack = jnp.zeros((4 * C, C), jnp.float32)
    wpack = wpack.at[0:C, :].set(wh1)
    wpack = wpack.at[C:2 * C, :].set(wh2)
    wpack = wpack.at[2 * C:2 * C + Cm, 0:Cm].set(wm1)
    wpack = wpack.at[3 * C:4 * C, 0:Cm].set(wm2)
    bpack = jnp.zeros((4 * C, 1), jnp.float32)
    bpack = bpack.at[0:C].set(bh1)
    bpack = bpack.at[C:2 * C].set(bh2)
    bpack = bpack.at[2 * C:2 * C + Cm].set(bm1)
    bpack = bpack.at[3 * C:4 * C].set(bm2)
    return wpack.astype(jnp.bfloat16), bpack


def clfr_forward(f_h, f_m, params):
    """f_h: (B, in_c, Hh, Wh) NCHW.  f_m: (B, in_c//2, Hm, Wm) NCHW (resnet=True branch)."""
    B, C, Hh, Wh = f_h.shape
    _, Cm, Hm, Wm = f_m.shape
    Hp, Wp = Hm // 2, Wm // 2
    Nh, Nm = Hh * Wh, Hp * Wp
    assert Nm == Nh, "pooled mid-level spatial size must match high-level spatial size"
    assert Cm == C // 2

    # Pad the spatial (lane) axis up to a full 128-lane tile: per-batch slices / stores
    # inside the kernel stay tile aligned and output stores are unmasked vst.
    Nhp, Nmp = _ceil_to(Nh, 128), _ceil_to(Nm, 128)

    xh = f_h.reshape(B, C, Nh).astype(jnp.float32)
    xh = jnp.pad(xh, ((0, 0), (0, 0), (0, Nhp - Nh)))

    # De-interleave the four 2x2-window positions onto four contiguous tile-aligned lane
    # slabs (1x1 conv + BN + LeakyReLU are pointwise, so they commute with this spatial
    # permutation) -> MaxPool2d(2) becomes an elementwise max inside the kernel.
    xm = jnp.transpose(f_m.reshape(B, Cm, Hp, 2, Wp, 2), (0, 1, 3, 5, 2, 4))
    xm = xm.reshape(B, Cm, 4, Nm)
    xm = jnp.pad(xm, ((0, 0), (0, 0), (0, 0), (0, Nmp - Nm)))
    xm = xm.reshape(B, Cm, 4 * Nmp).astype(jnp.float32)

    wpack, bpack = _pack_params(params, C, Cm)

    kernel = functools.partial(_clfr_fused_kernel, batch=B, c=C, cm=Cm,
                               n_h=Nh, n_m=Nm, n_hp=Nhp, n_mp=Nmp)

    flops = 2 * B * (2 * C * C * Nhp + (Cm * Cm + C * Cm) * 4 * Nmp + 7 * C * Nmp * Nhp)
    transcendentals = 2 * B * Nmp * Nhp
    bytes_accessed = (4 * (xh.size + xm.size + B * C * Nhp + B * C * Nmp)
                      + 2 * wpack.size + 4 * bpack.size)

    def full(shape):
        return pl.BlockSpec(shape, lambda i, _s=shape: (0,) * len(_s))

    oh, om = pl.pallas_call(
        kernel,
        out_shape=(jax.ShapeDtypeStruct((B, C, Nhp), jnp.float32),
                   jax.ShapeDtypeStruct((B, C, Nmp), jnp.float32)),
        grid=(1,),
        in_specs=[full((B, C, Nhp)), full((B, Cm, 4 * Nmp)),
                  full(wpack.shape), full(bpack.shape)],
        out_specs=(full((B, C, Nhp)), full((B, C, Nmp))),
        compiler_params=pltpu.CompilerParams(
            dimension_semantics=("arbitrary",),
            vmem_limit_bytes=48 * 1024 * 1024),
        cost_estimate=pl.CostEstimate(flops=flops, transcendentals=transcendentals,
                                      bytes_accessed=bytes_accessed),
    )(xh, xm, wpack, bpack)

    # (B, C, N_pad) -> (B, C, H, W), dropping padded lanes; matches the PyTorch .view()s.
    frh = oh[:, :, :Nh].reshape(B, C, Hh, Wh)
    frm = om[:, :, :Nm].reshape(B, C, Hh, Wh)
    return frh, frm


# ----------------------------------------------------------------------------- params

def _fold_conv_bn(w, b, gamma, beta, mean, var, eps=1e-5):
    """Fold eval-mode BatchNorm into the 1x1 conv: y = scale*(Wx+b-mean)+beta."""
    scale = gamma / jnp.sqrt(var + eps)
    w_eff = (scale[:, None] * w).astype(jnp.float32)
    b_eff = (scale * (b - mean) + beta).reshape(-1, 1).astype(jnp.float32)
    return w_eff, b_eff


def init_params(key, in_c):
    keys = jax.random.split(key, 4)

    def conv_bn(k, cout, cin):
        kw, kb, kg, kbe, km, kv = jax.random.split(k, 6)
        # Conv2d(cin, cout, 1) weight (cout, cin, 1, 1) stored squeezed as (cout, cin).
        w = 0.2 * jax.random.normal(kw, (cout, cin), dtype=jnp.float32)
        b = 0.1 * jax.random.normal(kb, (cout,), dtype=jnp.float32)
        gamma = 1.0 + 0.1 * jax.random.normal(kg, (cout,), dtype=jnp.float32)
        beta = 0.1 * jax.random.normal(kbe, (cout,), dtype=jnp.float32)
        mean = 0.1 * jax.random.normal(km, (cout,), dtype=jnp.float32)
        var = jax.random.uniform(kv, (cout,), minval=0.5, maxval=1.5, dtype=jnp.float32)
        return _fold_conv_bn(w, b, gamma, beta, mean, var)

    return {
        'h1': conv_bn(keys[0], in_c, in_c),
        'h2': conv_bn(keys[1], in_c, in_c),
        'm1': conv_bn(keys[2], in_c // 2, in_c // 2),
        'm2': conv_bn(keys[3], in_c, in_c // 2),
    }


# ----------------------------------------------------------------------------- reference

def ref_forward(f_h, f_m, params):
    def conv_bn_lrelu_ref(x, w_eff, b_eff):
        y = jnp.einsum('oc,bchw->bohw', w_eff, x) + b_eff.reshape(1, -1, 1, 1)
        return jnp.where(y >= 0, y, 0.2 * y)

    def maxpool_ref(x):
        B, C, H, W = x.shape
        return x.reshape(B, C, H // 2, 2, W // 2, 2).max(axis=(3, 5))

    xh = conv_bn_lrelu_ref(f_h, *params['h1'])
    xh = conv_bn_lrelu_ref(xh, *params['h2'])
    xm = conv_bn_lrelu_ref(f_m, *params['m1'])
    xm = conv_bn_lrelu_ref(xm, *params['m2'])
    xm = maxpool_ref(xm)

    B, C, Hh, Wh = xh.shape
    fh = xh.reshape(B, C, -1)
    fm = xm.reshape(B, C, -1)
    mhm = jnp.einsum('bcm,bcn->bmn', fm, fh)
    mhm = jnp.tanh(mhm / jnp.linalg.norm(mhm))
    frh = jnp.einsum('bcm,bmn->bcn', fm, mhm) + fh
    mmh = jnp.einsum('bcn,bcm->bnm', frh, fm)
    mmh = jnp.tanh(mmh / jnp.linalg.norm(mmh))
    frm = jnp.einsum('bcn,bnm->bcm', frh, mmh) + fm
    return frh.reshape(B, C, Hh, Wh), frm.reshape(-1, C, Hh, Wh)


# ----------------------------------------------------------------------------- main

if __name__ == "__main__":
    key = jax.random.PRNGKey(0)
    in_c = 8
    B = 2
    Hh = Wh = 8        # high-level feature spatial
    Hm = Wm = 16       # mid-level feature spatial (maxpooled by 2 -> matches Hh, Wh)

    k_fh, k_fm, k_p = jax.random.split(key, 3)
    f_h = jax.random.normal(k_fh, (B, in_c, Hh, Wh), dtype=jnp.float32)
    f_m = jax.random.normal(k_fm, (B, in_c // 2, Hm, Wm), dtype=jnp.float32)
    params = init_params(k_p, in_c)

    fwd = jax.jit(clfr_forward)
    out_h, out_m = fwd(f_h, f_m, params)
    jax.block_until_ready((out_h, out_m))

    ref_h, ref_m = ref_forward(f_h, f_m, params)
    np.testing.assert_allclose(np.asarray(out_h), np.asarray(ref_h), rtol=2e-2, atol=2e-2)
    np.testing.assert_allclose(np.asarray(out_m), np.asarray(ref_m), rtol=2e-2, atol=2e-2)
    assert out_h.shape == (B, in_c, Hh, Wh) and out_m.shape == (B, in_c, Hh, Wh)

    print("KERNEL_OK")
</pallas_src>

<mosaic_0001>
module attributes {stable_mosaic.version = 11 : i64} {
  func.func @_clfr_fused_kernel(%arg0: i32, %arg1: memref<2x8x128xf32, #tpu.memory_space<vmem>>, %arg2: memref<2x4x512xf32, #tpu.memory_space<vmem>>, %arg3: memref<32x8xbf16, #tpu.memory_space<vmem>>, %arg4: memref<32x1xf32, #tpu.memory_space<vmem>>, %arg5: memref<2x8x128xf32, #tpu.memory_space<vmem>>, %arg6: memref<2x8x128xf32, #tpu.memory_space<vmem>>) attributes {dimension_semantics = [#tpu.dimension_semantics<arbitrary>], iteration_bounds = array<i64: 1>, scalar_prefetch = 0 : i64, scratch_operands = 0 : i64, tpu.core_type = #tpu.core_type<tc>, window_params = [{pipeline_mode = #tpu.pipeline_mode<synchronous>, transform_indices = @transform_0, window_bounds = array<i64: 2, 8, 128>}, {pipeline_mode = #tpu.pipeline_mode<synchronous>, transform_indices = @transform_1, window_bounds = array<i64: 2, 4, 512>}, {pipeline_mode = #tpu.pipeline_mode<synchronous>, transform_indices = @transform_2, window_bounds = array<i64: 32, 8>}, {pipeline_mode = #tpu.pipeline_mode<synchronous>, transform_indices = @transform_3, window_bounds = array<i64: 32, 1>}, {pipeline_mode = #tpu.pipeline_mode<synchronous>, transform_indices = @transform_4, window_bounds = array<i64: 2, 8, 128>}, {pipeline_mode = #tpu.pipeline_mode<synchronous>, transform_indices = @transform_5, window_bounds = array<i64: 2, 8, 128>}]} {
    %c0 = arith.constant 0 : index
    %c0_0 = arith.constant 0 : index
    %0 = vector.load %arg3[%c0, %c0_0] : memref<32x8xbf16, #tpu.memory_space<vmem>>, vector<32x8xbf16>
    %c0_1 = arith.constant 0 : index
    %c0_2 = arith.constant 0 : index
    %1 = vector.load %arg4[%c0_1, %c0_2] : memref<32x1xf32, #tpu.memory_space<vmem>>, vector<32x1xf32>
    %2 = vector.extract_strided_slice %0 {offsets = [0, 0], sizes = [8, 8], strides = [1, 1]} : vector<32x8xbf16> to vector<8x8xbf16>
    %3 = vector.extract_strided_slice %0 {offsets = [8, 0], sizes = [8, 8], strides = [1, 1]} : vector<32x8xbf16> to vector<8x8xbf16>
    %4 = vector.extract_strided_slice %0 {offsets = [16, 0], sizes = [4, 4], strides = [1, 1]} : vector<32x8xbf16> to vector<4x4xbf16>
    %5 = vector.extract_strided_slice %0 {offsets = [24, 0], sizes = [8, 4], strides = [1, 1]} : vector<32x8xbf16> to vector<8x4xbf16>
    %6 = vector.extract_strided_slice %1 {offsets = [0, 0], sizes = [8, 1], strides = [1, 1]} : vector<32x1xf32> to vector<8x1xf32>
    %7 = vector.extract_strided_slice %1 {offsets = [8, 0], sizes = [8, 1], strides = [1, 1]} : vector<32x1xf32> to vector<8x1xf32>
    %8 = vector.extract_strided_slice %1 {offsets = [16, 0], sizes = [4, 1], strides = [1, 1]} : vector<32x1xf32> to vector<4x1xf32>
    %9 = vector.extract_strided_slice %1 {offsets = [24, 0], sizes = [8, 1], strides = [1, 1]} : vector<32x1xf32> to vector<8x1xf32>
    %10 = tpu.iota {dimensions = array<i32: 1>} : vector<1x128xi32>
    %c64_i32 = arith.constant 64 : i32
    %11 = vector.broadcast %c64_i32 : i32 to vector<1x128xi32>
    %12 = arith.cmpi slt, %10, %11 : vector<1x128xi32>
    %13 = arith.extui %12 : vector<1x128xi1> to vector<1x128xi32>
    %14 = arith.sitofp %13 : vector<1x128xi32> to vector<1x128xf32>
    %15 = tpu.iota {dimensions = array<i32: 1>} : vector<1x128xi32>
    %c64_i32_3 = arith.constant 64 : i32
    %16 = vector.broadcast %c64_i32_3 : i32 to vector<1x128xi32>
    %17 = arith.cmpi slt, %15, %16 : vector<1x128xi32>
    %18 = arith.extui %17 : vector<1x128xi1> to vector<1x128xi32>
    %19 = arith.sitofp %18 : vector<1x128xi32> to vector<1x128xf32>
    %cst = arith.constant 0.000000e+00 : f32
    %20 = vector.broadcast %cst : f32 to vector<1x1xf32>
    %c0_4 = arith.constant 0 : index
    %c0_5 = arith.constant 0 : index
    %c0_6 = arith.constant 0 : index
    %21 = vector.load %arg1[%c0_4, %c0_5, %c0_6] : memref<2x8x128xf32, #tpu.memory_space<vmem>>, vector<1x8x128xf32>
    %22 = vector.shape_cast %21 : vector<1x8x128xf32> to vector<8x128xf32>
    %23 = arith.truncf %22 : vector<8x128xf32> to vector<8x128xbf16>
    %cst_7 = arith.constant dense<0.000000e+00> : vector<8x128xf32>
    %24 = tpu.matmul %2, %23, %cst_7 {dimension_numbers = #tpu.dot_dimension_numbers<[1], [0], [0], [1], [0, 0, 1, 1], [], []>} : vector<8x8xbf16>, vector<8x128xbf16>, vector<8x128xf32> -> vector<8x128xf32>
    %25 = vector.broadcast %6 : vector<8x1xf32> to vector<8x128xf32>
    %26 = arith.addf %24, %25 : vector<8x128xf32>
    %cst_8 = arith.constant 2.000000e-01 : f32
    %27 = vector.broadcast %cst_8 : f32 to vector<8x128xf32>
    %28 = arith.mulf %27, %26 : vector<8x128xf32>
    %29 = arith.maximumf %26, %28 : vector<8x128xf32>
    %30 = arith.truncf %29 : vector<8x128xf32> to vector<8x128xbf16>
    %cst_9 = arith.constant dense<0.000000e+00> : vector<8x128xf32>
    %31 = tpu.matmul %3, %30, %cst_9 {dimension_numbers = #tpu.dot_dimension_numbers<[1], [0], [0], [1], [0, 0, 1, 1], [], []>} : vector<8x8xbf16>, vector<8x128xbf16>, vector<8x128xf32> -> vector<8x128xf32>
    %32 = vector.broadcast %7 : vector<8x1xf32> to vector<8x128xf32>
    %33 = arith.addf %31, %32 : vector<8x128xf32>
    %cst_10 = arith.constant 2.000000e-01 : f32
    %34 = vector.broadcast %cst_10 : f32 to vector<8x128xf32>
    %35 = arith.mulf %34, %33 : vector<8x128xf32>
    %36 = arith.maximumf %33, %35 : vector<8x128xf32>
    %c0_11 = arith.constant 0 : index
    %c0_12 = arith.constant 0 : index
    %c0_13 = arith.constant 0 : index
    %37 = vector.load %arg2[%c0_11, %c0_12, %c0_13] : memref<2x4x512xf32, #tpu.memory_space<vmem>>, vector<1x4x512xf32>
    %38 = vector.shape_cast %37 : vector<1x4x512xf32> to vector<4x512xf32>
    %39 = arith.truncf %38 : vector<4x512xf32> to vector<4x512xbf16>
    %cst_14 = arith.constant dense<0.000000e+00> : vector<4x512xf32>
    %40 = tpu.matmul %4, %39, %cst_14 {dimension_numbers = #tpu.dot_dimension_numbers<[1], [0], [0], [1], [0, 0, 1, 1], [], []>} : vector<4x4xbf16>, vector<4x512xbf16>, vector<4x512xf32> -> vector<4x512xf32>
    %41 = vector.broadcast %8 : vector<4x1xf32> to vector<4x512xf32>
    %42 = arith.addf %40, %41 : vector<4x512xf32>
    %cst_15 = arith.constant 2.000000e-01 : f32
    %43 = vector.broadcast %cst_15 : f32 to vector<4x512xf32>
    %44 = arith.mulf %43, %42 : vector<4x512xf32>
    %45 = arith.maximumf %42, %44 : vector<4x512xf32>
    %46 = arith.truncf %45 : vector<4x512xf32> to vector<4x512xbf16>
    %cst_16 = arith.constant dense<0.000000e+00> : vector<8x512xf32>
    %47 = tpu.matmul %5, %46, %cst_16 {dimension_numbers = #tpu.dot_dimension_numbers<[1], [0], [0], [1], [0, 0, 1, 1], [], []>} : vector<8x4xbf16>, vector<4x512xbf16>, vector<8x512xf32> -> vector<8x512xf32>
    %48 = vector.broadcast %9 : vector<8x1xf32> to vector<8x512xf32>
    %49 = arith.addf %47, %48 : vector<8x512xf32>
    %cst_17 = arith.constant 2.000000e-01 : f32
    %50 = vector.broadcast %cst_17 : f32 to vector<8x512xf32>
    %51 = arith.mulf %50, %49 : vector<8x512xf32>
    %52 = arith.maximumf %49, %51 : vector<8x512xf32>
    %53 = vector.extract_strided_slice %52 {offsets = [0, 0], sizes = [8, 128], strides = [1, 1]} : vector<8x512xf32> to vector<8x128xf32>
    %54 = vector.extract_strided_slice %52 {offsets = [0, 128], sizes = [8, 128], strides = [1, 1]} : vector<8x512xf32> to vector<8x128xf32>
    %55 = arith.maximumf %53, %54 : vector<8x128xf32>
    %56 = vector.extract_strided_slice %52 {offsets = [0, 256], sizes = [8, 128], strides = [1, 1]} : vector<8x512xf32> to vector<8x128xf32>
    %57 = vector.extract_strided_slice %52 {offsets = [0, 384], sizes = [8, 128], strides = [1, 1]} : vector<8x512xf32> to vector<8x128xf32>
    %58 = arith.maximumf %56, %57 : vector<8x128xf32>
    %59 = arith.maximumf %55, %58 : vector<8x128xf32>
    %60 = vector.broadcast %14 : vector<1x128xf32> to vector<8x128xf32>
    %61 = arith.mulf %36, %60 : vector<8x128xf32>
    %62 = vector.broadcast %19 : vector<1x128xf32> to vector<8x128xf32>
    %63 = arith.mulf %59, %62 : vector<8x128xf32>
    %c0_18 = arith.constant 0 : index
    %c0_19 = arith.constant 0 : index
    %c0_20 = arith.constant 0 : index
    %64 = vector.load %arg5[%c0_18, %c0_19, %c0_20] : memref<2x8x128xf32, #tpu.memory_space<vmem>>, vector<1x8x128xf32>
    %65 = vector.shape_cast %64 : vector<1x8x128xf32> to vector<8x128xf32>
    %66 = vector.shape_cast %61 : vector<8x128xf32> to vector<1x8x128xf32>
    tpu.vector_store %arg5[%c0_18, %c0_19, %c0_20], %66 {strides = array<i32>} : memref<2x8x128xf32, #tpu.memory_space<vmem>>, vector<1x8x128xf32>,
    %c0_21 = arith.constant 0 : index
    %c0_22 = arith.constant 0 : index
    %c0_23 = arith.constant 0 : index
    %67 = vector.load %arg6[%c0_21, %c0_22, %c0_23] : memref<2x8x128xf32, #tpu.memory_space<vmem>>, vector<1x8x128xf32>
    %68 = vector.shape_cast %67 : vector<1x8x128xf32> to vector<8x128xf32>
    %69 = vector.shape_cast %63 : vector<8x128xf32> to vector<1x8x128xf32>
    tpu.vector_store %arg6[%c0_21, %c0_22, %c0_23], %69 {strides = array<i32>} : memref<2x8x128xf32, #tpu.memory_space<vmem>>, vector<1x8x128xf32>,
    %70 = arith.truncf %63 : vector<8x128xf32> to vector<8x128xbf16>
    %71 = arith.truncf %61 : vector<8x128xf32> to vector<8x128xbf16>
    %cst_24 = arith.constant dense<0.000000e+00> : vector<128x128xf32>
    %72 = tpu.matmul %70, %71, %cst_24 {dimension_numbers = #tpu.dot_dimension_numbers<[0], [0], [1], [1], [0, 1, 1, 1], [], []>} : vector<8x128xbf16>, vector<8x128xbf16>, vector<128x128xf32> -> vector<128x128xf32>
    %73 = arith.mulf %72, %72 : vector<128x128xf32>
    %74 = vector.shape_cast %73 : vector<128x128xf32> to vector<1x128x128xf32>
    %cst_25 = arith.constant dense<0.000000e+00> : vector<1xf32>
    %75 = vector.multi_reduction <add>, %74, %cst_25 [1, 2] : vector<1x128x128xf32> to vector<1xf32>
    %76 = vector.shape_cast %75 : vector<1xf32> to vector<1x1x1xf32>
    %77 = vector.extract %76[0, 0, 0] : f32 from vector<1x1x1xf32>
    %78 = vector.broadcast %77 : f32 to vector<1x1xf32>
    %79 = arith.addf %20, %78 : vector<1x1xf32>
    %c1 = arith.constant 1 : index
    %c0_26 = arith.constant 0 : index
    %c0_27 = arith.constant 0 : index
    %80 = vector.load %arg1[%c1, %c0_26, %c0_27] : memref<2x8x128xf32, #tpu.memory_space<vmem>>, vector<1x8x128xf32>
    %81 = vector.shape_cast %80 : vector<1x8x128xf32> to vector<8x128xf32>
    %82 = arith.truncf %81 : vector<8x128xf32> to vector<8x128xbf16>
    %cst_28 = arith.constant dense<0.000000e+00> : vector<8x128xf32>
    %83 = tpu.matmul %2, %82, %cst_28 {dimension_numbers = #tpu.dot_dimension_numbers<[1], [0], [0], [1], [0, 0, 1, 1], [], []>} : vector<8x8xbf16>, vector<8x128xbf16>, vector<8x128xf32> -> vector<8x128xf32>
    %84 = vector.broadcast %6 : vector<8x1xf32> to vector<8x128xf32>
    %85 = arith.addf %83, %84 : vector<8x128xf32>
    %cst_29 = arith.constant 2.000000e-01 : f32
    %86 = vector.broadcast %cst_29 : f32 to vector<8x128xf32>
    %87 = arith.mulf %86, %85 : vector<8x128xf32>
    %88 = arith.maximumf %85, %87 : vector<8x128xf32>
    %89 = arith.truncf %88 : vector<8x128xf32> to vector<8x128xbf16>
    %cst_30 = arith.constant dense<0.000000e+00> : vector<8x128xf32>
    %90 = tpu.matmul %3, %89, %cst_30 {dimension_numbers = #tpu.dot_dimension_numbers<[1], [0], [0], [1], [0, 0, 1, 1], [], []>} : vector<8x8xbf16>, vector<8x128xbf16>, vector<8x128xf32> -> vector<8x128xf32>
    %91 = vector.broadcast %7 : vector<8x1xf32> to vector<8x128xf32>
    %92 = arith.addf %90, %91 : vector<8x128xf32>
    %cst_31 = arith.constant 2.000000e-01 : f32
    %93 = vector.broadcast %cst_31 : f32 to vector<8x128xf32>
    %94 = arith.mulf %93, %92 : vector<8x128xf32>
    %95 = arith.maximumf %92, %94 : vector<8x128xf32>
    %c1_32 = arith.constant 1 : index
    %c0_33 = arith.constant 0 : index
    %c0_34 = arith.constant 0 : index
    %96 = vector.load %arg2[%c1_32, %c0_33, %c0_34] : memref<2x4x512xf32, #tpu.memory_space<vmem>>, vector<1x4x512xf32>
    %97 = vector.shape_cast %96 : vector<1x4x512xf32> to vector<4x512xf32>
    %98 = arith.truncf %97 : vector<4x512xf32> to vector<4x512xbf16>
    %cst_35 = arith.constant dense<0.000000e+00> : vector<4x512xf32>
    %99 = tpu.matmul %4, %98, %cst_35 {dimension_numbers = #tpu.dot_dimension_numbers<[1], [0], [0], [1], [0, 0, 1, 1], [], []>} : vector<4x4xbf16>, vector<4x512xbf16>, vector<4x512xf32> -> vector<4x512xf32>
    %100 = vector.broadcast %8 : vector<4x1xf32> to vector<4x512xf32>
    %101 = arith.addf %99, %100 : vector<4x512xf32>
    %cst_36 = arith.constant 2.000000e-01 : f32
    %102 = vector.broadcast %cst_36 : f32 to vector<4x512xf32>
    %103 = arith.mulf %102, %101 : vector<4x512xf32>
    %104 = arith.maximumf %101, %103 : vector<4x512xf32>
    %105 = arith.truncf %104 : vector<4x512xf32> to vector<4x512xbf16>
    %cst_37 = arith.constant dense<0.000000e+00> : vector<8x512xf32>
    %106 = tpu.matmul %5, %105, %cst_37 {dimension_numbers = #tpu.dot_dimension_numbers<[1], [0], [0], [1], [0, 0, 1, 1], [], []>} : vector<8x4xbf16>, vector<4x512xbf16>, vector<8x512xf32> -> vector<8x512xf32>
    %107 = vector.broadcast %9 : vector<8x1xf32> to vector<8x512xf32>
    %108 = arith.addf %106, %107 : vector<8x512xf32>
    %cst_38 = arith.constant 2.000000e-01 : f32
    %109 = vector.broadcast %cst_38 : f32 to vector<8x512xf32>
    %110 = arith.mulf %109, %108 : vector<8x512xf32>
    %111 = arith.maximumf %108, %110 : vector<8x512xf32>
    %112 = vector.extract_strided_slice %111 {offsets = [0, 0], sizes = [8, 128], strides = [1, 1]} : vector<8x512xf32> to vector<8x128xf32>
    %113 = vector.extract_strided_slice %111 {offsets = [0, 128], sizes = [8, 128], strides = [1, 1]} : vector<8x512xf32> to vector<8x128xf32>
    %114 = arith.maximumf %112, %113 : vector<8x128xf32>
    %115 = vector.extract_strided_slice %111 {offsets = [0, 256], sizes = [8, 128], strides = [1, 1]} : vector<8x512xf32> to vector<8x128xf32>
    %116 = vector.extract_strided_slice %111 {offsets = [0, 384], sizes = [8, 128], strides = [1, 1]} : vector<8x512xf32> to vector<8x128xf32>
    %117 = arith.maximumf %115, %116 : vector<8x128xf32>
    %118 = arith.maximumf %114, %117 : vector<8x128xf32>
    %119 = vector.broadcast %14 : vector<1x128xf32> to vector<8x128xf32>
    %120 = arith.mulf %95, %119 : vector<8x128xf32>
    %121 = vector.broadcast %19 : vector<1x128xf32> to vector<8x128xf32>
    %122 = arith.mulf %118, %121 : vector<8x128xf32>
    %c1_39 = arith.constant 1 : index
    %c0_40 = arith.constant 0 : index
    %c0_41 = arith.constant 0 : index
    %123 = vector.load %arg5[%c1_39, %c0_40, %c0_41] : memref<2x8x128xf32, #tpu.memory_space<vmem>>, vector<1x8x128xf32>
    %124 = vector.shape_cast %123 : vector<1x8x128xf32> to vector<8x128xf32>
    %125 = vector.shape_cast %120 : vector<8x128xf32> to vector<1x8x128xf32>
    tpu.vector_store %arg5[%c1_39, %c0_40, %c0_41], %125 {strides = array<i32>} : memref<2x8x128xf32, #tpu.memory_space<vmem>>, vector<1x8x128xf32>,
    %c1_42 = arith.constant 1 : index
    %c0_43 = arith.constant 0 : index
    %c0_44 = arith.constant 0 : index
    %126 = vector.load %arg6[%c1_42, %c0_43, %c0_44] : memref<2x8x128xf32, #tpu.memory_space<vmem>>, vector<1x8x128xf32>
    %127 = vector.shape_cast %126 : vector<1x8x128xf32> to vector<8x128xf32>
    %128 = vector.shape_cast %122 : vector<8x128xf32> to vector<1x8x128xf32>
    tpu.vector_store %arg6[%c1_42, %c0_43, %c0_44], %128 {strides = array<i32>} : memref<2x8x128xf32, #tpu.memory_space<vmem>>, vector<1x8x128xf32>,
    %129 = arith.truncf %122 : vector<8x128xf32> to vector<8x128xbf16>
    %130 = arith.truncf %120 : vector<8x128xf32> to vector<8x128xbf16>
    %cst_45 = arith.constant dense<0.000000e+00> : vector<128x128xf32>
    %131 = tpu.matmul %129, %130, %cst_45 {dimension_numbers = #tpu.dot_dimension_numbers<[0], [0], [1], [1], [0, 1, 1, 1], [], []>} : vector<8x128xbf16>, vector<8x128xbf16>, vector<128x128xf32> -> vector<128x128xf32>
    %132 = arith.mulf %131, %131 : vector<128x128xf32>
    %133 = vector.shape_cast %132 : vector<128x128xf32> to vector<1x128x128xf32>
    %cst_46 = arith.constant dense<0.000000e+00> : vector<1xf32>
    %134 = vector.multi_reduction <add>, %133, %cst_46 [1, 2] : vector<1x128x128xf32> to vector<1xf32>
    %135 = vector.shape_cast %134 : vector<1xf32> to vector<1x1x1xf32>
    %136 = vector.extract %135[0, 0, 0] : f32 from vector<1x1x1xf32>
    %137 = vector.broadcast %136 : f32 to vector<1x1xf32>
    %138 = arith.addf %79, %137 : vector<1x1xf32>
    %139 = math.rsqrt %138 : vector<1x1xf32>
    %cst_47 = arith.constant 0.000000e+00 : f32
    %140 = vector.broadcast %cst_47 : f32 to vector<1x1xf32>
    %c0_48 = arith.constant 0 : index
    %c0_49 = arith.constant 0 : index
    %c0_50 = arith.constant 0 : index
    %141 = vector.load %arg5[%c0_48, %c0_49, %c0_50] : memref<2x8x128xf32, #tpu.memory_space<vmem>>, vector<1x8x128xf32>
    %142 = vector.shape_cast %141 : vector<1x8x128xf32> to vector<8x128xf32>
    %c0_51 = arith.constant 0 : index
    %c0_52 = arith.constant 0 : index
    %c0_53 = arith.constant 0 : index
    %143 = vector.load %arg6[%c0_51, %c0_52, %c0_53] : memref<2x8x128xf32, #tpu.memory_space<vmem>>, vector<1x8x128xf32>
    %144 = vector.shape_cast %143 : vector<1x8x128xf32> to vector<8x128xf32>
    %145 = arith.truncf %144 : vector<8x128xf32> to vector<8x128xbf16>
    %146 = arith.truncf %142 : vector<8x128xf32> to vector<8x128xbf16>
    %cst_54 = arith.constant dense<0.000000e+00> : vector<128x128xf32>
    %147 = tpu.matmul %145, %146, %cst_54 {dimension_numbers = #tpu.dot_dimension_numbers<[0], [0], [1], [1], [0, 1, 1, 1], [], []>} : vector<8x128xbf16>, vector<8x128xbf16>, vector<128x128xf32> -> vector<128x128xf32>
    %148 = vector.broadcast %139 : vector<1x1xf32> to vector<128x128xf32>
    %149 = arith.mulf %147, %148 : vector<128x128xf32>
    %150 = math.tanh %149 : vector<128x128xf32>
    %151 = arith.truncf %150 : vector<128x128xf32> to vector<128x128xbf16>
    %cst_55 = arith.constant dense<0.000000e+00> : vector<8x128xf32>
    %152 = tpu.matmul %145, %151, %cst_55 {dimension_numbers = #tpu.dot_dimension_numbers<[1], [0], [0], [1], [0, 0, 1, 1], [], []>} : vector<8x128xbf16>, vector<128x128xbf16>, vector<8x128xf32> -> vector<8x128xf32>
    %153 = arith.addf %152, %142 : vector<8x128xf32>
    %c0_56 = arith.constant 0 : index
    %c0_57 = arith.constant 0 : index
    %c0_58 = arith.constant 0 : index
    %154 = vector.load %arg5[%c0_56, %c0_57, %c0_58] : memref<2x8x128xf32, #tpu.memory_space<vmem>>, vector<1x8x128xf32>
    %155 = vector.shape_cast %154 : vector<1x8x128xf32> to vector<8x128xf32>
    %156 = vector.shape_cast %153 : vector<8x128xf32> to vector<1x8x128xf32>
    tpu.vector_store %arg5[%c0_56, %c0_57, %c0_58], %156 {strides = array<i32>} : memref<2x8x128xf32, #tpu.memory_space<vmem>>, vector<1x8x128xf32>,
    %157 = arith.truncf %153 : vector<8x128xf32> to vector<8x128xbf16>
    %cst_59 = arith.constant dense<0.000000e+00> : vector<128x128xf32>
    %158 = tpu.matmul %157, %145, %cst_59 {dimension_numbers = #tpu.dot_dimension_numbers<[0], [0], [1], [1], [0, 1, 1, 1], [], []>} : vector<8x128xbf16>, vector<8x128xbf16>, vector<128x128xf32> -> vector<128x128xf32>
    %159 = arith.mulf %158, %158 : vector<128x128xf32>
    %160 = vector.shape_cast %159 : vector<128x128xf32> to vector<1x128x128xf32>
    %cst_60 = arith.constant dense<0.000000e+00> : vector<1xf32>
    %161 = vector.multi_reduction <add>, %160, %cst_60 [1, 2] : vector<1x128x128xf32> to vector<1xf32>
    %162 = vector.shape_cast %161 : vector<1xf32> to vector<1x1x1xf32>
    %163 = vector.extract %162[0, 0, 0] : f32 from vector<1x1x1xf32>
    %164 = vector.broadcast %163 : f32 to vector<1x1xf32>
    %165 = arith.addf %140, %164 : vector<1x1xf32>
    %c1_61 = arith.constant 1 : index
    %c0_62 = arith.constant 0 : index
    %c0_63 = arith.constant 0 : index
    %166 = vector.load %arg5[%c1_61, %c0_62, %c0_63] : memref<2x8x128xf32, #tpu.memory_space<vmem>>, vector<1x8x128xf32>
    %167 = vector.shape_cast %166 : vector<1x8x128xf32> to vector<8x128xf32>
    %c1_64 = arith.constant 1 : index
    %c0_65 = arith.constant 0 : index
    %c0_66 = arith.constant 0 : index
    %168 = vector.load %arg6[%c1_64, %c0_65, %c0_66] : memref<2x8x128xf32, #tpu.memory_space<vmem>>, vector<1x8x128xf32>
    %169 = vector.shape_cast %168 : vector<1x8x128xf32> to vector<8x128xf32>
    %170 = arith.truncf %169 : vector<8x128xf32> to vector<8x128xbf16>
    %171 = arith.truncf %167 : vector<8x128xf32> to vector<8x128xbf16>
    %cst_67 = arith.constant dense<0.000000e+00> : vector<128x128xf32>
    %172 = tpu.matmul %170, %171, %cst_67 {dimension_numbers = #tpu.dot_dimension_numbers<[0], [0], [1], [1], [0, 1, 1, 1], [], []>} : vector<8x128xbf16>, vector<8x128xbf16>, vector<128x128xf32> -> vector<128x128xf32>
    %173 = vector.broadcast %139 : vector<1x1xf32> to vector<128x128xf32>
    %174 = arith.mulf %172, %173 : vector<128x128xf32>
    %175 = math.tanh %174 : vector<128x128xf32>
    %176 = arith.truncf %175 : vector<128x128xf32> to vector<128x128xbf16>
    %cst_68 = arith.constant dense<0.000000e+00> : vector<8x128xf32>
    %177 = tpu.matmul %170, %176, %cst_68 {dimension_numbers = #tpu.dot_dimension_numbers<[1], [0], [0], [1], [0, 0, 1, 1], [], []>} : vector<8x128xbf16>, vector<128x128xbf16>, vector<8x128xf32> -> vector<8x128xf32>
    %178 = arith.addf %177, %167 : vector<8x128xf32>
    %c1_69 = arith.constant 1 : index
    %c0_70 = arith.constant 0 : index
    %c0_71 = arith.constant 0 : index
    %179 = vector.load %arg5[%c1_69, %c0_70, %c0_71] : memref<2x8x128xf32, #tpu.memory_space<vmem>>, vector<1x8x128xf32>
    %180 = vector.shape_cast %179 : vector<1x8x128xf32> to vector<8x128xf32>
    %181 = vector.shape_cast %178 : vector<8x128xf32> to vector<1x8x128xf32>
    tpu.vector_store %arg5[%c1_69, %c0_70, %c0_71], %181 {strides = array<i32>} : memref<2x8x128xf32, #tpu.memory_space<vmem>>, vector<1x8x128xf32>,
    %182 = arith.truncf %178 : vector<8x128xf32> to vector<8x128xbf16>
    %cst_72 = arith.constant dense<0.000000e+00> : vector<128x128xf32>
    %183 = tpu.matmul %182, %170, %cst_72 {dimension_numbers = #tpu.dot_dimension_numbers<[0], [0], [1], [1], [0, 1, 1, 1], [], []>} : vector<8x128xbf16>, vector<8x128xbf16>, vector<128x128xf32> -> vector<128x128xf32>
    %184 = arith.mulf %183, %183 : vector<128x128xf32>
    %185 = vector.shape_cast %184 : vector<128x128xf32> to vector<1x128x128xf32>
    %cst_73 = arith.constant dense<0.000000e+00> : vector<1xf32>
    %186 = vector.multi_reduction <add>, %185, %cst_73 [1, 2] : vector<1x128x128xf32> to vector<1xf32>
    %187 = vector.shape_cast %186 : vector<1xf32> to vector<1x1x1xf32>
    %188 = vector.extract %187[0, 0, 0] : f32 from vector<1x1x1xf32>
    %189 = vector.broadcast %188 : f32 to vector<1x1xf32>
    %190 = arith.addf %165, %189 : vector<1x1xf32>
    %191 = math.rsqrt %190 : vector<1x1xf32>
    %c0_74 = arith.constant 0 : index
    %c0_75 = arith.constant 0 : index
    %c0_76 = arith.constant 0 : index
    %192 = vector.load %arg5[%c0_74, %c0_75, %c0_76] : memref<2x8x128xf32, #tpu.memory_space<vmem>>, vector<1x8x128xf32>
    %193 = vector.shape_cast %192 : vector<1x8x128xf32> to vector<8x128xf32>
    %194 = arith.truncf %193 : vector<8x128xf32> to vector<8x128xbf16>
    %c0_77 = arith.constant 0 : index
    %c0_78 = arith.constant 0 : index
    %c0_79 = arith.constant 0 : index
    %195 = vector.load %arg6[%c0_77, %c0_78, %c0_79] : memref<2x8x128xf32, #tpu.memory_space<vmem>>, vector<1x8x128xf32>
    %196 = vector.shape_cast %195 : vector<1x8x128xf32> to vector<8x128xf32>
    %197 = arith.truncf %196 : vector<8x128xf32> to vector<8x128xbf16>
    %cst_80 = arith.constant dense<0.000000e+00> : vector<128x128xf32>
    %198 = tpu.matmul %194, %197, %cst_80 {dimension_numbers = #tpu.dot_dimension_numbers<[0], [0], [1], [1], [0, 1, 1, 1], [], []>} : vector<8x128xbf16>, vector<8x128xbf16>, vector<128x128xf32> -> vector<128x128xf32>
    %199 = vector.broadcast %191 : vector<1x1xf32> to vector<128x128xf32>
    %200 = arith.mulf %198, %199 : vector<128x128xf32>
    %201 = math.tanh %200 : vector<128x128xf32>
    %202 = arith.truncf %201 : vector<128x128xf32> to vector<128x128xbf16>
    %cst_81 = arith.constant dense<0.000000e+00> : vector<8x128xf32>
    %203 = tpu.matmul %194, %202, %cst_81 {dimension_numbers = #tpu.dot_dimension_numbers<[1], [0], [0], [1], [0, 0, 1, 1], [], []>} : vector<8x128xbf16>, vector<128x128xbf16>, vector<8x128xf32> -> vector<8x128xf32>
    %204 = arith.addf %203, %196 : vector<8x128xf32>
    %c0_82 = arith.constant 0 : index
    %c0_83 = arith.constant 0 : index
    %c0_84 = arith.constant 0 : index
    %205 = vector.load %arg6[%c0_82, %c0_83, %c0_84] : memref<2x8x128xf32, #tpu.memory_space<vmem>>, vector<1x8x128xf32>
    %206 = vector.shape_cast %205 : vector<1x8x128xf32> to vector<8x128xf32>
    %207 = vector.shape_cast %204 : vector<8x128xf32> to vector<1x8x128xf32>
    tpu.vector_store %arg6[%c0_82, %c0_83, %c0_84], %207 {strides = array<i32>} : memref<2x8x128xf32, #tpu.memory_space<vmem>>, vector<1x8x128xf32>,
    %c1_85 = arith.constant 1 : index
    %c0_86 = arith.constant 0 : index
    %c0_87 = arith.constant 0 : index
    %208 = vector.load %arg5[%c1_85, %c0_86, %c0_87] : memref<2x8x128xf32, #tpu.memory_space<vmem>>, vector<1x8x128xf32>
    %209 = vector.shape_cast %208 : vector<1x8x128xf32> to vector<8x128xf32>
    %210 = arith.truncf %209 : vector<8x128xf32> to vector<8x128xbf16>
    %c1_88 = arith.constant 1 : index
    %c0_89 = arith.constant 0 : index
    %c0_90 = arith.constant 0 : index
    %211 = vector.load %arg6[%c1_88, %c0_89, %c0_90] : memref<2x8x128xf32, #tpu.memory_space<vmem>>, vector<1x8x128xf32>
    %212 = vector.shape_cast %211 : vector<1x8x128xf32> to vector<8x128xf32>
    %213 = arith.truncf %212 : vector<8x128xf32> to vector<8x128xbf16>
    %cst_91 = arith.constant dense<0.000000e+00> : vector<128x128xf32>
    %214 = tpu.matmul %210, %213, %cst_91 {dimension_numbers = #tpu.dot_dimension_numbers<[0], [0], [1], [1], [0, 1, 1, 1], [], []>} : vector<8x128xbf16>, vector<8x128xbf16>, vector<128x128xf32> -> vector<128x128xf32>
    %215 = vector.broadcast %191 : vector<1x1xf32> to vector<128x128xf32>
    %216 = arith.mulf %214, %215 : vector<128x128xf32>
    %217 = math.tanh %216 : vector<128x128xf32>
    %218 = arith.truncf %217 : vector<128x128xf32> to vector<128x128xbf16>
    %cst_92 = arith.constant dense<0.000000e+00> : vector<8x128xf32>
    %219 = tpu.matmul %210, %218, %cst_92 {dimension_numbers = #tpu.dot_dimension_numbers<[1], [0], [0], [1], [0, 0, 1, 1], [], []>} : vector<8x128xbf16>, vector<128x128xbf16>, vector<8x128xf32> -> vector<8x128xf32>
    %220 = arith.addf %219, %212 : vector<8x128xf32>
    %c1_93 = arith.constant 1 : index
    %c0_94 = arith.constant 0 : index
    %c0_95 = arith.constant 0 : index
    %221 = vector.load %arg6[%c1_93, %c0_94, %c0_95] : memref<2x8x128xf32, #tpu.memory_space<vmem>>, vector<1x8x128xf32>
    %222 = vector.shape_cast %221 : vector<1x8x128xf32> to vector<8x128xf32>
    %223 = vector.shape_cast %220 : vector<8x128xf32> to vector<1x8x128xf32>
    tpu.vector_store %arg6[%c1_93, %c0_94, %c0_95], %223 {strides = array<i32>} : memref<2x8x128xf32, #tpu.memory_space<vmem>>, vector<1x8x128xf32>,
    return
  }
  func.func @transform_0(%arg0: i32) -> (i32, i32, i32) {
    %c0_i32 = arith.constant 0 : i32
    %c0_i32_0 = arith.constant 0 : i32
    %c0_i32_1 = arith.constant 0 : i32
    %c0_i32_2 = arith.constant 0 : i32
    return %c0_i32, %c0_i32_0, %c0_i32_1 : i32, i32, i32
  }
  func.func @transform_1(%arg0: i32) -> (i32, i32, i32) {
    %c0_i32 = arith.constant 0 : i32
    %c0_i32_0 = arith.constant 0 : i32
    %c0_i32_1 = arith.constant 0 : i32
    %c0_i32_2 = arith.constant 0 : i32
    return %c0_i32, %c0_i32_0, %c0_i32_1 : i32, i32, i32
  }
  func.func @transform_2(%arg0: i32) -> (i32, i32) {
    %c0_i32 = arith.constant 0 : i32
    %c0_i32_0 = arith.constant 0 : i32
    %c0_i32_1 = arith.constant 0 : i32
    return %c0_i32, %c0_i32_0 : i32, i32
  }
  func.func @transform_3(%arg0: i32) -> (i32, i32) {
    %c0_i32 = arith.constant 0 : i32
    %c0_i32_0 = arith.constant 0 : i32
    %c0_i32_1 = arith.constant 0 : i32
    return %c0_i32, %c0_i32_0 : i32, i32
  }
  func.func @transform_4(%arg0: i32) -> (i32, i32, i32) {
    %c0_i32 = arith.constant 0 : i32
    %c0_i32_0 = arith.constant 0 : i32
    %c0_i32_1 = arith.constant 0 : i32
    %c0_i32_2 = arith.constant 0 : i32
    return %c0_i32, %c0_i32_0, %c0_i32_1 : i32, i32, i32
  }
  func.func @transform_5(%arg0: i32) -> (i32, i32, i32) {
    %c0_i32 = arith.constant 0 : i32
    %c0_i32_0 = arith.constant 0 : i32
    %c0_i32_1 = arith.constant 0 : i32
    %c0_i32_2 = arith.constant 0 : i32
    return %c0_i32, %c0_i32_0, %c0_i32_1 : i32, i32, i32
  }
}

</mosaic_0001>

<bundles_post_ra>
// kernel: clfr_forward.1
= control target key start
LH: loop header
LB: loop body
LE: loop exit
PB: predicated region body
PF: predicated region fallthrough
CT: control target
= control target key end

     0   :  { %vm44_vm0 = vcmask 1043456   ;;  %v1943_v1 = vmov 0   ;;  %vm40_vm1 = vcmask 64512   ;;  %vm118_vm2 = vcmask 1041408   ;;  %s2388_s0 = inlined_call_operand.vmem [shape: f32[2,8,128], index: 0, kind: input, shape index: {}]   ;;  %s2389_s1 = inlined_call_operand.vmem [shape: f32[2,4,512], index: 1, kind: input, shape index: {}]   ;;  %s2390_s3 = inlined_call_operand.vmem [shape: f32[32,1], index: 3, kind: input, shape index: {}]   ;;  %s2391_s2 = inlined_call_operand.vmem [shape: bf16[32,8], index: 2, kind: input, shape index: {}]   ;;  %s2392_s5 = inlined_call_operand.vmem [shape: f32[2,8,128], index: 5, kind: output, shape index: {1}]   ;;  %s2393_s4 = inlined_call_operand.vmem [shape: f32[2,8,128], index: 4, kind: output, shape index: {0}]  }
   0x1   :  { %v33_v0 = vld [vmem:[%s2388_s0] sm:$0xff]  ;;  %1775 = vset.pattern.permute.xlu0 %v1943_v1  ;;  %1776 = vset.pattern.permute.xlu1 %v1943_v1  ;;  %v91_v5 = vld [vmem:[%s2389_s1 + $0x8] sm:$0xff]  ;;  %v1691_v8 = vld [vmem:[%s2389_s1 + $0x10] sm:$0xff]  ;;  %vm114_vm3 = vcmask 31744   ;;  %v28_v1 = vlaneseq }
   0x2   :  { %v34_v2 = vpack.c.bf16 %v33_v0, %v33_v0  ;;  %v90_v3 = vld [vmem:[%s2389_s1] sm:$0xff]  ;;  %96 = vst [vmem:[#allocation1 + $0x10] ss:$2 sm:$0xff] %v91_v5  ;;  %v26_v9 = vld [vmem:[%s2390_s3 + $0x10] sm:$0xff]  ;;  %v2007_v19 = vld [vmem:[%s2391_s2 + $0x8] sm:$0xf] }
   0x3   :  { %v24_v4 = vld [vmem:[%s2390_s3] sm:$0xff]  ;;  %94 = vst [vmem:[#allocation1] ss:$2 sm:$0xff] %v90_v3  ;;  %v1692_v21 = vld [vmem:[%s2389_s1 + $0x18] sm:$0xff]  ;;  %v25_v28 = vld [vmem:[%s2390_s3 + $0x8] sm:$0xff] }
   0x4   :  { %37 = vperm.xlu0 %1775, %v24_v4   ;;  %v46_v6 = vsel %vm44_vm0, %v34_v2, 0  ;;  %v1991_v7 = vld [vmem:[%s2391_s2] sm:$0xf]  ;;  %v27_v23 = vld [vmem:[%s2390_s3 + $0x18] sm:$0xff]  ;;  %v2035_v39 = vld [vmem:[%s2391_s2 + $0x4] sm:$0xf] }
   0x5   :  { %55 = vmatpush.bf16.msra.mxu2 %v46_v6  ;;  %197 = vperm.xlu1 %1776, %v27_v23   ;;  %v2043_v43 = vld [vmem:[%s2391_s2 + $0xc] sm:$0xf]  ;;  %v29_v2 = vand.u32 127, %v28_v1 }
   0x6   :  { %v1688_v53 = vld [vmem:[%s2388_s0 + $0x8] sm:$0xff] }
   0x7   :  { %v420_v55 = vpack.c.bf16 %v1688_v53, %v1688_v53  ;;  %vm30_vm4 = vcmp.lt.s32.totalorder %v29_v2, 64 }
   0x8   :  { %1670 = vmatmul.msk.bf16.vlgmr.msra.gmra.mxu2 %vm40_vm1, %v1991_v7 }
   0x9   :  { %v99_v13 = vld.sshfl [vmem:[#allocation1 + $0x10] sm:$0xff pattern:$0x75316420]  ;;  %v100_v20 = vld.sshfl [vmem:[#allocation1 + $0x18] sm:$0xff pattern:$0x75316420] }
   0xa   :  { %v97_v10 = vld.sshfl [vmem:[#allocation1] sm:$0xff pattern:$0x75316420]  ;;  %v98_v11 = vld.sshfl [vmem:[#allocation1 + $0x8] sm:$0xff pattern:$0x75316420]  ;;  %v107_v15 = vpack.c.bf16 %v99_v13, %v99_v13  ;;  %v108_v30 = vpack.c.bf16 %v100_v20, %v100_v20 }
   0xb   :  { %v105_v12 = vpack.c.bf16 %v97_v10, %v97_v10  ;;  %v106_v14 = vpack.c.bf16 %v98_v11, %v98_v11  ;;  %463 = vst [vmem:[#allocation1] ss:$2 sm:$0xff] %v1691_v8  ;;  %v422_v61 = vsel %vm44_vm0, %v420_v55, 0  ;;  %v1944_v8 = vmov 0.0  }
   0xc   :  { %111 = vperm.xlu0 %1775, %v26_v9   ;;  %v126_v18 = vsel %vm118_vm2, %v107_v15, 0  ;;  %465 = vst [vmem:[#allocation1 + $0x10] ss:$2 sm:$0xff] %v1692_v21  ;;  %v129_v36 = vsel %vm118_vm2, %v108_v30, 0  ;;  %v2071_v9 = vsel %vm30_vm4, 1.0, %v1944_v8 }
   0xd   :  { %v120_v16 = vsel %vm118_vm2, %v105_v12, 0  ;;  %v123_v17 = vsel %vm118_vm2, %v106_v14, 0  ;;  %164 = vmatpush.bf16.msra.mxu0 %v126_v18  ;;  %66 = vperm.xlu1 %1776, %v25_v28  }
   0xe   :  { %138 = vmatpush.bf16.msrb.mxu2 %v120_v16 }
  0x10   :  { %1674 = vmatmul.msk.bf16.vlgmr.msra.gmra.mxu0 %vm114_vm3, %v2007_v19 }
  0x12   :  { %151 = vmatpush.bf16.msra.mxu2 %v123_v17  ;;  %v467_v56 = vld.sshfl [vmem:[#allocation1 + $0x8] sm:$0xff pattern:$0x75316420]  ;;  %v466_v16 = vld.sshfl [vmem:[#allocation1] sm:$0xff pattern:$0x75316420] }
  0x13   :  { %v475_v59 = vpack.c.bf16 %v467_v56, %v467_v56  ;;  %v474_v18 = vpack.c.bf16 %v466_v16, %v466_v16  ;;  %v469_v23 = vld.sshfl [vmem:[#allocation1 + $0x18] sm:$0xff pattern:$0x75316420] }
  0x15   :  { %v482_v63 = vsel %vm118_vm2, %v475_v59, 0  ;;  %v479_v28 = vsel %vm118_vm2, %v474_v18, 0 }
  0x18   :  { %1672 = vmatmul.msk.bf16.vlgmr.msrb.gmra.mxu2 %vm114_vm3, %v2007_v19 }
  0x28   :  { %1673 = vmatmul.msk.bf16.vlgmr.msra.gmra.mxu2 %vm114_vm3, %v2007_v19 }
  0x76   :  { %v2018_v22 = vpop.permute.xlu0 %37 }
  0x77   :  { %v2066_v0 = vpop.permute.xlu1 %197 }
  0x7e   :  { %v2024_v26 = vpop.permute.xlu0 %111 }
  0x7f   :  { %v2068_v3 = vpop.permute.xlu1 %66 }
  0x8b   :  { %v57_v24 = vpop.f32.mrf.mxu2 }
  0x8c   :  { %v58_v25 = vadd.f32 %v57_v24, %v2018_v22 }
  0x8d   :  { %v166_v29 = vpop.f32.mrf.mxu0 }
  0x8e   :  { %v61_v27 = vmul.f32 0.2, %v58_v25  ;;  %v167_v32 = vadd.f32 %v166_v29, %v2024_v26 }
  0x90   :  { %v62_v31 = vmax.f32 %v58_v25, %v61_v27  ;;  %v185_v34 = vmul.f32 0.2, %v167_v32  ;;  %v477_v25 = vpack.c.bf16 %v469_v23, %v469_v23 }
  0x92   :  { %v63_v33 = vpack.c.bf16 %v62_v31, %v62_v31  ;;  %v189_v38 = vmax.f32 %v167_v32, %v185_v34  ;;  %v488_v30 = vsel %vm118_vm2, %v477_v25, 0 }
  0x93   :  { %v59_v35 = vpop.f32.mrf.mxu2 }
  0x94   :  { %v73_v37 = vsel %vm44_vm0, %v63_v33, 0  ;;  %v193_v40 = vpack.c.bf16 %v189_v38, %v189_v38 }
  0x95   :  { %82 = vmatpush.bf16.msra.mxu1 %v73_v37  ;;  %v168_v41 = vpop.f32.mrf.mxu0 }
  0x96   :  { %v210_v42 = vsel %vm118_vm2, %v193_v40, 0 }
  0x97   :  { %248 = vmatpush.bf16.msrb.mxu0 %v210_v42 }
  0x98   :  { %1671 = vmatmul.msk.bf16.vlgmr.msra.gmra.mxu1 %vm40_vm1, %v2035_v39 }
  0x99   :  { %177 = vmatpush.bf16.msrb.mxu1 %v129_v36 }
  0x9a   :  { %1678 = vmatmul.msk.bf16.vlgmr.msrb.gmra.mxu0 %vm114_vm3, %v2043_v43 }
  0x9b   :  { %v140_v44 = vpop.f32.mrf.mxu2 }
  0x9c   :  { %v141_v45 = vadd.f32 %v140_v44, %v2024_v26 }
  0x9e   :  { %v183_v46 = vmul.f32 0.2, %v141_v45 }
  0xa0   :  { %v187_v47 = vmax.f32 %v141_v45, %v183_v46  ;;  %v468_v46 = vld.sshfl [vmem:[#allocation1 + $0x10] sm:$0xff pattern:$0x75316420] }
  0xa2   :  { %v191_v48 = vpack.c.bf16 %v187_v47, %v187_v47 }
  0xa3   :  { %v142_v49 = vpop.f32.mrf.mxu2 }
  0xa4   :  { %v204_v50 = vsel %vm118_vm2, %v191_v48, 0  ;;  %v476_v48 = vpack.c.bf16 %v468_v46, %v468_v46 }
  0xa5   :  { %222 = vmatpush.bf16.msrb.mxu2 %v204_v50 }
  0xa6   :  { %v485_v53 = vsel %vm118_vm2, %v476_v48, 0 }
  0xa8   :  { %1675 = vmatmul.msk.bf16.vlgmr.msrb.gmra.mxu1 %vm114_vm3, %v2007_v19  ;;  %1676 = vmatmul.msk.bf16.vlgmr.msrb.gmra.mxu2 %vm114_vm3, %v2043_v43 }
  0xab   :  { %v153_v51 = vpop.f32.mrf.mxu2 }
  0xac   :  { %v154_v52 = vadd.f32 %v153_v51, %v2024_v26 }
  0xae   :  { %v184_v54 = vmul.f32 0.2, %v154_v52 }
  0xb0   :  { %v188_v57 = vmax.f32 %v154_v52, %v184_v54 }
  0xb2   :  { %v192_v58 = vpack.c.bf16 %v188_v57, %v188_v57 }
  0xb3   :  { %v155_v60 = vpop.f32.mrf.mxu2 }
  0xb4   :  { %v207_v62 = vsel %vm118_vm2, %v192_v58, 0 }
  0xb5   :  { %235 = vmatpush.bf16.msra.mxu3 %v207_v62 }
  0xb8   :  { %1677 = vmatmul.msk.bf16.vlgmr.msra.gmra.mxu3 %vm114_vm3, %v2043_v43 }
  0xb9   :  { %431 = vmatpush.bf16.msrb.mxu3 %v422_v61 }
  0xbd   :  { %510 = vmatpush.bf16.msra.mxu3 %v482_v63 }
  0xc8   :  { %1689 = vmatmul.msk.bf16.vlgmr.msrb.gmra.mxu3 %vm40_vm1, %v1991_v7 }
  0xd8   :  { %1694 = vmatmul.msk.bf16.vlgmr.msra.gmra.mxu3 %vm114_vm3, %v2007_v19 }
 0x115   :  { %v84_v4 = vpop.f32.mrf.mxu1 }
 0x116   :  { %v85_v5 = vadd.f32 %v84_v4, %v2068_v3 }
 0x117   :  { %v250_v42 = vpop.f32.mrf.mxu0 }
 0x118   :  { %v88_v6 = vmul.f32 0.2, %v85_v5  ;;  %v251_v61 = vadd.f32 %v250_v42, %v2066_v0 }
 0x11a   :  { %v89_v10 = vmax.f32 %v85_v5, %v88_v6  ;;  %v269_v62 = vmul.f32 0.2, %v251_v61 }
 0x11c   :  { %v2074_v7 = vmul.f32 %v2071_v9, %v89_v10  ;;  %v273_v1 = vmax.f32 %v251_v61, %v269_v62 }
 0x11d   :  { %v86_v11 = vpop.f32.mrf.mxu1 }
 0x11e   :  { %v283_v12 = vpack.c.bf16 %v2074_v7, %v2074_v7 }
 0x11f   :  { %v252_v50 = vpop.f32.mrf.mxu0 }
 0x120   :  { %v2079_v13 = vsel %vm44_vm0, %v283_v12, 0 }
 0x121   :  { %334 = vmatpush.bf16.msra.mxu2 %v2079_v13 }
 0x125   :  { %v179_v14 = vpop.f32.mrf.mxu1 }
 0x126   :  { %v180_v15 = vadd.f32 %v179_v14, %v2024_v26 }
 0x128   :  { %v186_v17 = vmul.f32 0.2, %v180_v15 }
 0x12a   :  { %v190_v20 = vmax.f32 %v180_v15, %v186_v17 }
 0x12b   :  { %v224_v21 = vpop.f32.mrf.mxu2 }
 0x12c   :  { %v194_v24 = vpack.c.bf16 %v190_v20, %v190_v20  ;;  %v225_v32 = vadd.f32 %v224_v21, %v2066_v0 }
 0x12d   :  { %v181_v27 = vpop.f32.mrf.mxu1 }
 0x12e   :  { %v213_v29 = vsel %vm118_vm2, %v194_v24, 0  ;;  %v267_v33 = vmul.f32 0.2, %v225_v32 }
 0x12f   :  { %261 = vmatpush.bf16.msra.mxu1 %v213_v29 }
 0x130   :  { %v271_v36 = vmax.f32 %v225_v32, %v267_v33 }
 0x132   :  { %1679 = vmatmul.msk.bf16.vlgmr.msra.gmra.mxu1 %vm114_vm3, %v2043_v43 }
 0x133   :  { %497 = vmatpush.bf16.msrb.mxu1 %v479_v28  ;;  %v226_v31 = vpop.f32.mrf.mxu2 }
 0x137   :  { %536 = vmatpush.bf16.msra.mxu1 %v488_v30 }
 0x13b   :  { %v237_v34 = vpop.f32.mrf.mxu3 }
 0x13c   :  { %v238_v35 = vadd.f32 %v237_v34, %v2066_v0 }
 0x13e   :  { %v268_v37 = vmul.f32 0.2, %v238_v35 }
 0x140   :  { %v272_v38 = vmax.f32 %v238_v35, %v268_v37 }
 0x142   :  { %v275_v40 = vmax.f32 %v271_v36, %v272_v38  ;;  %1693 = vmatmul.msk.bf16.vlgmr.msrb.gmra.mxu1 %vm114_vm3, %v2007_v19 }
 0x143   :  { %v239_v41 = vpop.f32.mrf.mxu3 }
 0x14b   :  { %v433_v44 = vpop.f32.mrf.mxu3 }
 0x14c   :  { %v434_v45 = vadd.f32 %v433_v44, %v2018_v22 }
 0x14e   :  { %v437_v47 = vmul.f32 0.2, %v434_v45 }
 0x150   :  { %v438_v49 = vmax.f32 %v434_v45, %v437_v47 }
 0x152   :  { %v439_v51 = vpack.c.bf16 %v438_v49, %v438_v49  ;;  %1696 = vmatmul.msk.bf16.vlgmr.msra.gmra.mxu1 %vm114_vm3, %v2007_v19 }
 0x153   :  { %v435_v52 = vpop.f32.mrf.mxu3 }
 0x154   :  { %v441_v54 = vsel %vm44_vm0, %v439_v51, 0 }
 0x155   :  { %450 = vmatpush.bf16.msra.mxu0 %v441_v54 }
 0x158   :  { %1690 = vmatmul.msk.bf16.vlgmr.msra.gmra.mxu0 %vm40_vm1, %v2035_v39 }
 0x159   :  { %523 = vmatpush.bf16.msrb.mxu0 %v485_v53 }
 0x15b   :  { %v512_v22 = vpop.f32.mrf.mxu3 }
 0x15c   :  { %v513_v55 = vadd.f32 %v512_v22, %v2024_v26 }
 0x15e   :  { %v543_v56 = vmul.f32 0.2, %v513_v55 }
 0x160   :  { %v547_v57 = vmax.f32 %v513_v55, %v543_v56 }
 0x162   :  { %v551_v58 = vpack.c.bf16 %v547_v57, %v547_v57 }
 0x163   :  { %v514_v59 = vpop.f32.mrf.mxu3 }
 0x164   :  { %v558_v60 = vsel %vm118_vm2, %v551_v58, 0 }
 0x165   :  { %586 = vmatpush.bf16.msra.mxu0 %v558_v60 }
 0x168   :  { %1695 = vmatmul.msk.bf16.vlgmr.msrb.gmra.mxu0 %vm114_vm3, %v2007_v19 }
 0x178   :  { %1698 = vmatmul.msk.bf16.vlgmr.msra.gmra.mxu0 %vm114_vm3, %v2043_v43 }
 0x1af   :  { %v263_v39 = vpop.f32.mrf.mxu1 }
 0x1b0   :  { %v264_v63 = vadd.f32 %v263_v39, %v2066_v0 }
 0x1b2   :  { %v270_v2 = vmul.f32 0.2, %v264_v63 }
 0x1b4   :  { %v274_v4 = vmax.f32 %v264_v63, %v270_v2 }
 0x1b6   :  { %v276_v5 = vmax.f32 %v273_v1, %v274_v4 }
 0x1b7   :  { %v265_v6 = vpop.f32.mrf.mxu1 }
 0x1b8   :  { %v277_v8 = vmax.f32 %v275_v40, %v276_v5 }
 0x1ba   :  { %v2113_v20 = vmul.f32 %v2071_v9, %v277_v8 }
 0x1bc   :  { %v2117_v25 = vpack.c.bf16 %v2113_v20, %v2113_v20 }
 0x1be   :  { %v2123_v32 = vsel %vm44_vm0, %v2117_v25, 0 }
 0x1bf   :  { %v499_v10 = vpop.f32.mrf.mxu1 }
 0x1c0   :  { %v500_v11 = vadd.f32 %v499_v10, %v2024_v26 }
 0x1c2   :  { %v542_v12 = vmul.f32 0.2, %v500_v11 }
 0x1c4   :  { %v546_v19 = vmax.f32 %v500_v11, %v542_v12 }
 0x1c6   :  { %v550_v14 = vpack.c.bf16 %v546_v19, %v546_v19 }
 0x1c7   :  { %v501_v15 = vpop.f32.mrf.mxu1 }
 0x1c8   :  { %v555_v16 = vsel %vm118_vm2, %v550_v14, 0 }
 0x1c9   :  { %573 = vmatpush.bf16.msrb.mxu3 %v555_v16 }
 0x1cc   :  { %1697 = vmatmul.msk.bf16.vlgmr.msrb.gmra.mxu3 %vm114_vm3, %v2043_v43 }
 0x1cf   :  { %v538_v17 = vpop.f32.mrf.mxu1 }
 0x1d0   :  { %v539_v18 = vadd.f32 %v538_v17, %v2024_v26 }
 0x1d2   :  { %v545_v21 = vmul.f32 0.2, %v539_v18 }
 0x1d4   :  { %v549_v23 = vmax.f32 %v539_v18, %v545_v21 }
 0x1d5   :  { %v452_v24 = vpop.f32.mrf.mxu0 }
 0x1d6   :  { %v553_v27 = vpack.c.bf16 %v549_v23, %v549_v23  ;;  %v453_v28 = vadd.f32 %v452_v24, %v2068_v3 }
 0x1d7   :  { %v540_v29 = vpop.f32.mrf.mxu1 }
 0x1d8   :  { %v456_v30 = vmul.f32 0.2, %v453_v28  ;;  %v564_v31 = vsel %vm118_vm2, %v553_v27, 0 }
 0x1d9   :  { %612 = vmatpush.bf16.msra.mxu3 %v564_v31 }
 0x1da   :  { %v457_v33 = vmax.f32 %v453_v28, %v456_v30 }
 0x1dc   :  { %v2127_v34 = vmul.f32 %v2071_v9, %v457_v33  ;;  %1700 = vmatmul.msk.bf16.vlgmr.msra.gmra.mxu3 %vm114_vm3, %v2043_v43 }
 0x1dd   :  { %982 = vmatpush.bf16.msrb.mxu3 %v2123_v32  ;;  %v454_v35 = vpop.f32.mrf.mxu0 }
 0x1de   :  { %v636_v3 = vpack.c.bf16 %v2127_v34, %v2127_v34 }
 0x1e0   :  { %v2134_v36 = vsel %vm44_vm0, %v636_v3, 0 }
 0x1e1   :  { %687 = vmatpush.bf16.msrb.mxu0 %v2134_v36 }
 0x1e5   :  { %v525_v37 = vpop.f32.mrf.mxu0 }
 0x1e6   :  { %v526_v38 = vadd.f32 %v525_v37, %v2024_v26 }
 0x1e8   :  { %v544_v40 = vmul.f32 0.2, %v526_v38 }
 0x1ea   :  { %v548_v41 = vmax.f32 %v526_v38, %v544_v40 }
 0x1ec   :  { %v552_v42 = vpack.c.bf16 %v548_v41, %v548_v41 }
 0x1ed   :  { %v527_v44 = vpop.f32.mrf.mxu0 }
 0x1ee   :  { %v561_v45 = vsel %vm118_vm2, %v552_v42, 0 }
 0x1ef   :  { %599 = vmatpush.bf16.msrb.mxu1 %v561_v45 }
 0x1f2   :  { %1699 = vmatmul.msk.bf16.vlgmr.msrb.gmra.mxu1 %vm114_vm3, %v2043_v43 }
 0x1f3   :  { %835 = vmatpush.bf16.msra.mxu1 %v2079_v13 }
 0x1f5   :  { %v588_v46 = vpop.f32.mrf.mxu0 }
 0x1f6   :  { %v589_v52 = vadd.f32 %v588_v46, %v2066_v0 }
 0x1f8   :  { %v619_v22 = vmul.f32 0.2, %v589_v52 }
 0x1fa   :  { %v623_v43 = vmax.f32 %v589_v52, %v619_v22 }
 0x1fd   :  { %v590_v47 = vpop.f32.mrf.mxu0 }
 0x24f   :  { %v575_v48 = vpop.f32.mrf.mxu3 }
 0x250   :  { %v576_v26 = vadd.f32 %v575_v48, %v2066_v0 }
 0x252   :  { %v618_v54 = vmul.f32 0.2, %v576_v26 }
 0x254   :  { %v622_v57 = vmax.f32 %v576_v26, %v618_v54 }
 0x256   :  { %v626_v61 = vmax.f32 %v622_v57, %v623_v43 }
 0x257   :  { %v577_v49 = vpop.f32.mrf.mxu3 }
 0x25f   :  { %v614_v50 = vpop.f32.mrf.mxu3 }
 0x260   :  { %v615_v53 = vadd.f32 %v614_v50, %v2066_v0 }
 0x262   :  { %v621_v56 = vmul.f32 0.2, %v615_v53 }
 0x264   :  { %v625_v59 = vmax.f32 %v615_v53, %v621_v56 }
 0x267   :  { %v616_v51 = vpop.f32.mrf.mxu3 }
 0x26f   :  { %v601_v55 = vpop.f32.mrf.mxu1 }
 0x270   :  { %v602_v13 = vadd.f32 %v601_v55, %v2066_v0 }
 0x272   :  { %v620_v58 = vmul.f32 0.2, %v602_v13 }
 0x274   :  { %v624_v60 = vmax.f32 %v602_v13, %v620_v58 }
 0x276   :  { %v627_v62 = vmax.f32 %v624_v60, %v625_v59 }
 0x277   :  { %v603_v39 = vpop.f32.mrf.mxu1 }
 0x278   :  { %v628_v63 = vmax.f32 %v626_v61, %v627_v62 }
 0x27a   :  { %v630_v1 = vmul.f32 %v2071_v9, %v628_v63 }
 0x27c   :  { %1702 = vst [vmem:[%s2392_s5 + $0x8] sm:$0xff] %v630_v1  ;;  %v2150_v2 = vpack.c.bf16 %v630_v1, %v630_v1 }
 0x27e   :  { %1777 = vxpose.binary.xlu2.c.b16.start.end [1/2] (short) %v2150_v2, %v2117_v25, 128  ;;  %v1258_v0 = vsel %vm44_vm0, %v2150_v2, 0 }
 0x27f   :  { %1267 = vmatpush.bf16.msrb.mxu1 %v1258_v0 }
 0x2fe   :  { %785 = vxpose.xlu2.c.b16.start.end [1/1] (short) %v2117_v25, 128 }
 0x31f   :  { %v1778_v4 = vpop.trf.xlu2 }
 0x320   :  { %1680 = vmatmul.msk.bf16.vlgmr.msra.gmra.mxu2 %vm40_vm1, %v1778_v4 }
 0x327   :  { %v1779_v5 = vpop.trf.xlu2 }
 0x328   :  { %1703 = vmatmul.msk.bf16.vlgmr.msrb.gmra.mxu0 %vm40_vm1, %v1779_v5 }
 0x32f   :  { %v1780_v9 = vpop.trf.xlu2 }
 0x330   :  { %1681 = vmatmul.msk.bf16.gmra.mxu2 %vm40_vm1, %v1780_v9 }
 0x337   :  { %v1781_v6 = vpop.trf.xlu2 }
 0x338   :  { %1704 = vmatmul.msk.bf16.gmra.mxu0 %vm40_vm1, %v1781_v6 }
 0x33f   :  { %v1782_v8 = vpop.trf.xlu2 }
 0x340   :  { %1682 = vmatmul.msk.bf16.gmra.mxu2 %vm40_vm1, %v1782_v8 }
 0x347   :  { %v1783_v10 = vpop.trf.xlu2 }
 0x348   :  { %1705 = vmatmul.msk.bf16.gmra.mxu0 %vm40_vm1, %v1783_v10 }
 0x34f   :  { %v1784_v11 = vpop.trf.xlu2 }
 0x350   :  { %1683 = vmatmul.msk.bf16.gmra.mxu2 %vm40_vm1, %v1784_v11 }
 0x357   :  { %v1785_v12 = vpop.trf.xlu2 }
 0x358   :  { %1706 = vmatmul.msk.bf16.gmra.mxu0 %vm40_vm1, %v1785_v12 }
 0x35f   :  { %v1786_v19 = vpop.trf.xlu2 }
 0x360   :  { %1684 = vmatmul.msk.bf16.gmra.mxu2 %vm40_vm1, %v1786_v19 }
 0x367   :  { %v1787_v14 = vpop.trf.xlu2 }
 0x368   :  { %1707 = vmatmul.msk.bf16.gmra.mxu0 %vm40_vm1, %v1787_v14 }
 0x36f   :  { %v1788_v15 = vpop.trf.xlu2 }
 0x370   :  { %1685 = vmatmul.msk.bf16.gmra.mxu2 %vm40_vm1, %v1788_v15 }
 0x377   :  { %v1789_v16 = vpop.trf.xlu2 }
 0x378   :  { %1708 = vmatmul.msk.bf16.gmra.mxu0 %vm40_vm1, %v1789_v16 }
 0x37f   :  { %v1790_v17 = vpop.trf.xlu2 }
 0x380   :  { %1686 = vmatmul.msk.bf16.gmra.mxu2 %vm40_vm1, %v1790_v17 }
 0x387   :  { %v1791_v18 = vpop.trf.xlu2 }
 0x388   :  { %1709 = vmatmul.msk.bf16.gmra.mxu0 %vm40_vm1, %v1791_v18 }
 0x38f   :  { %v1792_v21 = vpop.trf.xlu2 }
 0x390   :  { %1687 = vmatmul.msk.bf16.gmra.mxu2 %vm40_vm1, %v1792_v21 }
 0x397   :  { %v1793_v23 = vpop.trf.xlu2 }
 0x398   :  { %1710 = vmatmul.msk.bf16.gmra.mxu0 %vm40_vm1, %v1793_v23 }
 0x39f   :  { %v793_v56 = vpop.trf.xlu2 }
 0x3a0   :  { %1711 = vmatmul.msk.bf16.vlgmr.msra.gmra.mxu1 %vm40_vm1, %v793_v56 }
 0x3a3   :  { %v336_v24 = vpop.f32.mrf.mxu2 }
 0x3a4   :  { %v376_v31 = vmul.f32 %v336_v24, %v336_v24 }
 0x3a5   :  { %v689_v27 = vpop.f32.mrf.mxu0 }
 0x3a6   :  { %v729_v3 = vmul.f32 %v689_v27, %v689_v27 }
 0x3ab   :  { %v338_v28 = vpop.f32.mrf.mxu2 }
 0x3ac   :  { %v377_v30 = vmul.f32 %v338_v28, %v338_v28 }
 0x3ad   :  { %v691_v29 = vpop.f32.mrf.mxu0 }
 0x3ae   :  { %v730_v33 = vmul.f32 %v691_v29, %v691_v29  ;;  %v392_v37 = vadd.f32 %v377_v30, %v376_v31 }
 0x3af   :  { %v794_v59 = vpop.trf.xlu2 }
 0x3b0   :  { %v745_v41 = vadd.f32 %v730_v33, %v729_v3  ;;  %1712 = vmatmul.msk.bf16.gmra.mxu1 %vm40_vm1, %v794_v59 }
 0x3b3   :  { %v341_v35 = vpop.f32.mrf.mxu2 }
 0x3b4   :  { %v378_v38 = vmul.f32 %v341_v35, %v341_v35 }
 0x3b5   :  { %v694_v40 = vpop.f32.mrf.mxu0 }
 0x3b6   :  { %v393_v42 = vadd.f32 %v392_v37, %v378_v38  ;;  %v731_v44 = vmul.f32 %v694_v40, %v694_v40 }
 0x3b8   :  { %v746_v45 = vadd.f32 %v745_v41, %v731_v44 }
 0x3bb   :  { %v343_v46 = vpop.f32.mrf.mxu2 }
 0x3bc   :  { %v379_v48 = vmul.f32 %v343_v46, %v343_v46 }
 0x3bd   :  { %v696_v47 = vpop.f32.mrf.mxu0 }
 0x3be   :  { %v732_v49 = vmul.f32 %v696_v47, %v696_v47  ;;  %v394_v51 = vadd.f32 %v393_v42, %v379_v48 }
 0x3bf   :  { %v795_v63 = vpop.trf.xlu2 }
 0x3c0   :  { %v747_v53 = vadd.f32 %v746_v45, %v732_v49  ;;  %1713 = vmatmul.msk.bf16.gmra.mxu1 %vm40_vm1, %v795_v63 }
 0x3c3   :  { %v346_v50 = vpop.f32.mrf.mxu2 }
 0x3c4   :  { %v380_v26 = vmul.f32 %v346_v50, %v346_v50 }
 0x3c5   :  { %v699_v52 = vpop.f32.mrf.mxu0 }
 0x3c6   :  { %v395_v54 = vadd.f32 %v394_v51, %v380_v26  ;;  %v733_v22 = vmul.f32 %v699_v52, %v699_v52 }
 0x3c8   :  { %v748_v55 = vadd.f32 %v747_v53, %v733_v22 }
 0x3cb   :  { %v348_v13 = vpop.f32.mrf.mxu2 }
 0x3cc   :  { %v381_v12 = vmul.f32 %v348_v13, %v348_v13 }
 0x3cd   :  { %v701_v57 = vpop.f32.mrf.mxu0 }
 0x3ce   :  { %v734_v14 = vmul.f32 %v701_v57, %v701_v57  ;;  %v396_v16 = vadd.f32 %v395_v54, %v381_v12 }
 0x3cf   :  { %v796_v9 = vpop.trf.xlu2 }
 0x3d0   :  { %1714 = vmatmul.msk.bf16.gmra.mxu1 %vm40_vm1, %v796_v9  ;;  %v749_v23 = vadd.f32 %v748_v55, %v734_v14 }
 0x3d3   :  { %v351_v43 = vpop.f32.mrf.mxu2 }
 0x3d4   :  { %v382_v15 = vmul.f32 %v351_v43, %v351_v43 }
 0x3d5   :  { %v704_v58 = vpop.f32.mrf.mxu0 }
 0x3d6   :  { %v735_v17 = vmul.f32 %v704_v58, %v704_v58  ;;  %v397_v24 = vadd.f32 %v396_v16, %v382_v15 }
 0x3d8   :  { %v750_v30 = vadd.f32 %v749_v23, %v735_v17 }
 0x3db   :  { %v353_v60 = vpop.f32.mrf.mxu2 }
 0x3dc   :  { %v383_v18 = vmul.f32 %v353_v60, %v353_v60 }
 0x3dd   :  { %v706_v61 = vpop.f32.mrf.mxu0 }
 0x3de   :  { %v736_v27 = vmul.f32 %v706_v61, %v706_v61  ;;  %v398_v31 = vadd.f32 %v397_v24, %v383_v18 }
 0x3df   :  { %v797_v19 = vpop.trf.xlu2 }
 0x3e0   :  { %1715 = vmatmul.msk.bf16.gmra.mxu1 %vm40_vm1, %v797_v19  ;;  %v751_v3 = vadd.f32 %v750_v30, %v736_v27 }
 0x3e3   :  { %v356_v62 = vpop.f32.mrf.mxu2 }
 0x3e4   :  { %v384_v28 = vmul.f32 %v356_v62, %v356_v62 }
 0x3e5   :  { %v709_v39 = vpop.f32.mrf.mxu0 }
 0x3e6   :  { %v737_v33 = vmul.f32 %v709_v39, %v709_v39  ;;  %v399_v37 = vadd.f32 %v398_v31, %v384_v28 }
 0x3e8   :  { %v752_v41 = vadd.f32 %v751_v3, %v737_v33 }
 0x3eb   :  { %v358_v1 = vpop.f32.mrf.mxu2 }
 0x3ec   :  { %v385_v35 = vmul.f32 %v358_v1, %v358_v1 }
 0x3ed   :  { %v711_v0 = vpop.f32.mrf.mxu0 }
 0x3ee   :  { %v738_v38 = vmul.f32 %v711_v0, %v711_v0  ;;  %v400_v42 = vadd.f32 %v399_v37, %v385_v35 }
 0x3ef   :  { %v798_v22 = vpop.trf.xlu2 }
 0x3f0   :  { %v753_v47 = vadd.f32 %v752_v41, %v738_v38  ;;  %1716 = vmatmul.msk.bf16.gmra.mxu1 %vm40_vm1, %v798_v22 }
 0x3f3   :  { %v361_v4 = vpop.f32.mrf.mxu2 }
 0x3f4   :  { %v386_v40 = vmul.f32 %v361_v4, %v361_v4 }
 0x3f5   :  { %v714_v5 = vpop.f32.mrf.mxu0 }
 0x3f6   :  { %v739_v44 = vmul.f32 %v714_v5, %v714_v5  ;;  %v401_v48 = vadd.f32 %v400_v42, %v386_v40 }
 0x3f8   :  { %v754_v26 = vadd.f32 %v753_v47, %v739_v44 }
 0x3fb   :  { %v363_v6 = vpop.f32.mrf.mxu2 }
 0x3fc   :  { %v387_v45 = vmul.f32 %v363_v6, %v363_v6 }
 0x3fd   :  { %v716_v8 = vpop.f32.mrf.mxu0 }
 0x3fe   :  { %v740_v49 = vmul.f32 %v716_v8, %v716_v8  ;;  %v402_v52 = vadd.f32 %v401_v48, %v387_v45 }
 0x3ff   :  { %v799_v9 = vpop.trf.xlu2 }
 0x400   :  { %v755_v55 = vadd.f32 %v754_v26, %v740_v49  ;;  %1717 = vmatmul.msk.bf16.gmra.mxu1 %vm40_vm1, %v799_v9 }
 0x403   :  { %v366_v10 = vpop.f32.mrf.mxu2 }
 0x404   :  { %v388_v50 = vmul.f32 %v366_v10, %v366_v10 }
 0x405   :  { %v719_v11 = vpop.f32.mrf.mxu0 }
 0x406   :  { %v741_v53 = vmul.f32 %v719_v11, %v719_v11  ;;  %v403_v56 = vadd.f32 %v402_v52, %v388_v50 }
 0x408   :  { %v756_v43 = vadd.f32 %v755_v55, %v741_v53 }
 0x40b   :  { %v368_v21 = vpop.f32.mrf.mxu2 }
 0x40c   :  { %v389_v54 = vmul.f32 %v368_v21, %v368_v21 }
 0x40d   :  { %v721_v29 = vpop.f32.mrf.mxu0 }
 0x40e   :  { %v742_v13 = vmul.f32 %v721_v29, %v721_v29  ;;  %v404_v58 = vadd.f32 %v403_v56, %v389_v54 }
 0x40f   :  { %v800_v6 = vpop.trf.xlu2 }
 0x410   :  { %v757_v61 = vadd.f32 %v756_v43, %v742_v13  ;;  %1718 = vmatmul.msk.bf16.gmra.mxu1 %vm40_vm1, %v800_v6 }
 0x413   :  { %v371_v46 = vpop.f32.mrf.mxu2 }
 0x414   :  { %v390_v57 = vmul.f32 %v371_v46, %v371_v46 }
 0x415   :  { %v724_v51 = vpop.f32.mrf.mxu0 }
 0x416   :  { %v743_v59 = vmul.f32 %v724_v51, %v724_v51  ;;  %v405_v62 = vadd.f32 %v404_v58, %v390_v57 }
 0x418   :  { %v758_v1 = vadd.f32 %v757_v61, %v743_v59 }
 0x41b   :  { %v373_v60 = vpop.f32.mrf.mxu2 }
 0x41c   :  { %v391_v39 = vmul.f32 %v373_v60, %v373_v60 }
 0x41d   :  { %v726_v63 = vpop.f32.mrf.mxu0  ;;  %v2182_v8 = vpop.f32.mrf.mxu1 }
 0x41e   :  { %v744_v0 = vmul.f32 %v726_v63, %v726_v63  ;;  %v406_v4 = vadd.f32 %v405_v62, %v391_v39 }
 0x420   :  { %407 = vadd.xlane.f32.xlu0 %v406_v4  ;;  %v759_v5 = vadd.f32 %v758_v1, %v744_v0 }
 0x422   :  { %760 = vadd.xlane.f32.xlu1 %v759_v5 }
 0x425   :  { %v2184_v10 = vpop.f32.mrf.mxu1 }
 0x42d   :  { %v2186_v11 = vpop.f32.mrf.mxu1 }
 0x435   :  { %v2188_v12 = vpop.f32.mrf.mxu1 }
 0x43d   :  { %v2190_v19 = vpop.f32.mrf.mxu1 }
 0x445   :  { %v2192_v14 = vpop.f32.mrf.mxu1 }
 0x449   :  { %1070 = vxpose.xlu0.c.b16.start.end [1/1] (short) %v2150_v2, 128 }
 0x44d   :  { %v852_v29 = vpop.f32.mrf.mxu1 }
 0x455   :  { %v854_v37 = vpop.f32.mrf.mxu1 }
 0x45d   :  { %v857_v38 = vpop.f32.mrf.mxu1 }
 0x465   :  { %v859_v40 = vpop.f32.mrf.mxu1 }
 0x46d   :  { %v862_v41 = vpop.f32.mrf.mxu1 }
 0x475   :  { %v864_v42 = vpop.f32.mrf.mxu1 }
 0x47d   :  { %v867_v47 = vpop.f32.mrf.mxu1 }
 0x485   :  { %v869_v50 = vpop.f32.mrf.mxu1 }
 0x48d   :  { %v872_v53 = vpop.f32.mrf.mxu1 }
 0x493   :  { %v408_v15 = vpop.xlane.xlu0 %407 }
 0x494   :  { %v409_v16 = vrot.slane %v408_v15, 4 }
 0x495   :  { %v761_v17 = vpop.xlane.xlu1 %760  ;;  %v874_v56 = vpop.f32.mrf.mxu1 }
 0x496   :  { %v410_v18 = vadd.f32 %v409_v16, %v408_v15  ;;  %v762_v21 = vrot.slane %v761_v17, 4 }
 0x498   :  { %v411_v23 = vrot.slane %v410_v18, 2  ;;  %v763_v24 = vadd.f32 %v762_v21, %v761_v17 }
 0x49a   :  { %v764_v27 = vrot.slane %v763_v24, 2  ;;  %v412_v28 = vadd.f32 %v411_v23, %v410_v18 }
 0x49c   :  { %v413_v30 = vrot.slane %v412_v28, 1  ;;  %v765_v31 = vadd.f32 %v764_v27, %v763_v24 }
 0x49e   :  { %v414_v33 = vadd.f32 %v413_v30, %v412_v28  ;;  %v766_v35 = vrot.slane %v765_v31, 1 }
 0x4a0   :  { %1765 = vpush %v414_v33  ;;  %v767_v3 = vadd.f32 %v766_v35, %v765_v31 }
 0x4a2   :  { %1767 = vpush %v767_v3 }
 0x4d1   :  { %s1766_s19 = spop %1765 }
 0x4d2   :  { %v416_v44 = vstv %s1766_s19 }
 0x4d3   :  { %s1768_s20 = spop %1767 }
 0x4d4   :  { %v769_v45 = vstv %s1768_s20 }
 0x4d5   :  { %v770_v46 = vadd.f32 %v769_v45, %v416_v44 }
 0x4d7   :  { %1811 = vrsqrt.f32 %v770_v46  ;;  %vm777_vm6 = vweird.f32 %v770_v46 }
 0x4dd   :  { %v1812_v48 = vpop.eup %1811 }
 0x4de   :  { %v772_v49 = vmul.f32 %v1812_v48, %v770_v46  ;;  %vm778_vm5 = vweird.f32 %v1812_v48 }
 0x4df   :  { %vm779_vm7 = vmor %vm777_vm6, %vm778_vm5 }
 0x4e0   :  { %v773_v51 = vmul.f32 %v1812_v48, %v772_v49 }
 0x4e2   :  { %v774_v26 = vmul.f32 0.5, %v773_v51 }
 0x4e4   :  { %v775_v52 = vsub.f32 1.5, %v774_v26 }
 0x4e6   :  { %v776_v54 = vmul.f32 %v1812_v48, %v775_v52 }
 0x4e8   :  { %v2194_v22 = vsel %vm779_vm7, %v1812_v48, %v776_v54 }
 0x4e9   :  { %v891_v55 = vmul.f32 %v872_v53, %v2194_v22  ;;  %v892_v13 = vmul.f32 %v874_v56, %v2194_v22  ;;  %v889_v57 = vmul.f32 %v867_v47, %v2194_v22  ;;  %v890_v43 = vmul.f32 %v869_v50, %v2194_v22 }
 0x4ea   :  { %v887_v58 = vmul.f32 %v862_v41, %v2194_v22  ;;  %v888_v59 = vmul.f32 %v864_v42, %v2194_v22  ;;  %v885_v61 = vmul.f32 %v857_v38, %v2194_v22  ;;  %v886_v39 = vmul.f32 %v859_v40, %v2194_v22 }
 0x4eb   :  { %1813 = vtanh.f32 %v891_v55  ;;  %v883_v4 = vmul.f32 %v852_v29, %v2194_v22  ;;  %v884_v5 = vmul.f32 %v854_v37, %v2194_v22  ;;  %v881_v16 = vmul.f32 %v2190_v19, %v2194_v22 }
 0x4ec   :  { %1815 = vtanh.f32 %v892_v13  ;;  %v882_v17 = vmul.f32 %v2192_v14, %v2194_v22  ;;  %v879_v24 = vmul.f32 %v2186_v11, %v2194_v22  ;;  %v880_v27 = vmul.f32 %v2188_v12, %v2194_v22 }
 0x4ed   :  { %1817 = vtanh.f32 %v889_v57  ;;  %v877_v30 = vmul.f32 %v2182_v8, %v2194_v22  ;;  %v878_v14 = vmul.f32 %v2184_v10, %v2194_v22 }
 0x4ee   :  { %1819 = vtanh.f32 %v890_v43 }
 0x4ef   :  { %1821 = vtanh.f32 %v887_v58 }
 0x4f0   :  { %1823 = vtanh.f32 %v888_v59 }
 0x4f1   :  { %v1814_v60 = vpop.eup %1813  ;;  %1825 = vtanh.f32 %v885_v61 }
 0x4f2   :  { %v1816_v62 = vpop.eup %1815  ;;  %1827 = vtanh.f32 %v886_v39 }
 0x4f3   :  { %v1818_v63 = vpop.eup %1817  ;;  %v916_v1 = vpack.c.bf16 %v1816_v62, %v1814_v60  ;;  %1829 = vtanh.f32 %v883_v4 }
 0x4f4   :  { %v1820_v0 = vpop.eup %1819  ;;  %1831 = vtanh.f32 %v884_v5 }
 0x4f5   :  { %917 = vmatpush.bf16.msrb.mxu2 %v916_v1  ;;  %v1822_v9 = vpop.eup %1821  ;;  %v915_v6 = vpack.c.bf16 %v1820_v0, %v1818_v63  ;;  %1833 = vtanh.f32 %v881_v16  ;;  %v1078_v10 = vpop.trf.xlu0 }
 0x4f6   :  { %v1824_v15 = vpop.eup %1823  ;;  %1835 = vtanh.f32 %v882_v17 }
 0x4f7   :  { %v1826_v18 = vpop.eup %1825  ;;  %v914_v21 = vpack.c.bf16 %v1824_v15, %v1822_v9  ;;  %1837 = vtanh.f32 %v879_v24 }
 0x4f8   :  { %v1828_v23 = vpop.eup %1827  ;;  %1839 = vtanh.f32 %v880_v27 }
 0x4f9   :  { %918 = vmatpush.bf16.msrb.mxu2 %v915_v6  ;;  %v1830_v28 = vpop.eup %1829  ;;  %v913_v19 = vpack.c.bf16 %v1828_v23, %v1826_v18  ;;  %1841 = vtanh.f32 %v877_v30 }
 0x4fa   :  { %v1832_v29 = vpop.eup %1831  ;;  %1843 = vtanh.f32 %v878_v14 }
 0x4fb   :  { %v1834_v31 = vpop.eup %1833  ;;  %v912_v11 = vpack.c.bf16 %v1832_v29, %v1830_v28 }
 0x4fc   :  { %v1836_v33 = vpop.eup %1835 }
 0x4fd   :  { %919 = vmatpush.bf16.msrb.mxu2 %v914_v21  ;;  %v1838_v12 = vpop.eup %1837  ;;  %v911_v35 = vpack.c.bf16 %v1836_v33, %v1834_v31 }
 0x4fe   :  { %v1840_v3 = vpop.eup %1839 }
 0x4ff   :  { %v1842_v37 = vpop.eup %1841  ;;  %v910_v38 = vpack.c.bf16 %v1840_v3, %v1838_v12 }
 0x500   :  { %v1844_v40 = vpop.eup %1843 }
 0x501   :  { %920 = vmatpush.bf16.msrb.mxu2 %v913_v19  ;;  %v909_v8 = vpack.c.bf16 %v1844_v40, %v1842_v37 }
 0x505   :  { %921 = vmatpush.bf16.msrb.mxu2 %v912_v11  ;;  %v1079_v41 = vpop.trf.xlu0 }
 0x509   :  { %922 = vmatpush.bf16.msrb.mxu2 %v911_v35 }
 0x50d   :  { %923 = vmatpush.bf16.msrb.mxu2 %v910_v38 }
 0x511   :  { %924 = vmatpush.bf16.msrb.mxu2 %v909_v8 }
 0x514   :  { %925 = vmatmul.bf16.vlgmr.msrb.gmra.mxu2 %v2117_v25 }
 0x515   :  { %1120 = vmatpush.bf16.msra.mxu2 %v2134_v36  ;;  %v1080_v42 = vpop.trf.xlu0 }
 0x524   :  { %1729 = vmatmul.msk.bf16.vlgmr.msra.gmra.mxu2 %vm40_vm1, %v1078_v10 }
 0x525   :  { %v1081_v44 = vpop.trf.xlu0 }
 0x534   :  { %1730 = vmatmul.msk.bf16.gmra.mxu2 %vm40_vm1, %v1079_v41 }
 0x535   :  { %v1082_v45 = vpop.trf.xlu0 }
 0x544   :  { %1731 = vmatmul.msk.bf16.gmra.mxu2 %vm40_vm1, %v1080_v42 }
 0x545   :  { %v1083_v46 = vpop.trf.xlu0 }
 0x554   :  { %1732 = vmatmul.msk.bf16.gmra.mxu2 %vm40_vm1, %v1081_v44 }
 0x555   :  { %v1084_v36 = vpop.trf.xlu0 }
 0x564   :  { %1733 = vmatmul.msk.bf16.gmra.mxu2 %vm40_vm1, %v1082_v45 }
 0x565   :  { %v1085_v25 = vpop.trf.xlu0 }
 0x574   :  { %1734 = vmatmul.msk.bf16.gmra.mxu2 %vm40_vm1, %v1083_v46 }
 0x584   :  { %1735 = vmatmul.msk.bf16.gmra.mxu2 %vm40_vm1, %v1084_v36 }
 0x594   :  { %1736 = vmatmul.msk.bf16.gmra.mxu2 %vm40_vm1, %v1085_v25 }
 0x597   :  { %v926_v47 = vpop.f32.mrf.mxu2 }
 0x598   :  { %v927_v48 = vadd.f32 %v926_v47, %v2074_v7 }
 0x59a   :  { %930 = vst [vmem:[%s2393_s4] sm:$0xff] %v927_v48  ;;  %v2232_v49 = vpack.c.bf16 %v927_v48, %v927_v48 }
 0x59c   :  { %1365 = vxpose.xlu0.c.b16.start.end [1/1] (short) %v2232_v49, 128 }
 0x59f   :  { %v928_v50 = vpop.f32.mrf.mxu2 }
 0x5a7   :  { %v1122_v51 = vpop.f32.mrf.mxu2 }
 0x5a8   :  { %v1162_v26 = vmul.f32 %v1122_v51, %v2194_v22 }
 0x5aa   :  { %1845 = vtanh.f32 %v1162_v26 }
 0x5af   :  { %v1124_v52 = vpop.f32.mrf.mxu2 }
 0x5b0   :  { %v1163_v53 = vmul.f32 %v1124_v52, %v2194_v22  ;;  %v2237_v54 = vpop.eup %1845 }
 0x5b2   :  { %1847 = vtanh.f32 %v1163_v53 }
 0x5b7   :  { %v1127_v7 = vpop.f32.mrf.mxu2 }
 0x5b8   :  { %v2239_v55 = vpop.eup %1847  ;;  %v1164_v13 = vmul.f32 %v1127_v7, %v2194_v22 }
 0x5b9   :  { %v1194_v56 = vpack.c.bf16 %v2239_v55, %v2237_v54 }
 0x5ba   :  { %1849 = vtanh.f32 %v1164_v13 }
 0x5bf   :  { %v1129_v57 = vpop.f32.mrf.mxu2 }
 0x5c0   :  { %v1165_v43 = vmul.f32 %v1129_v57, %v2194_v22  ;;  %v2245_v58 = vpop.eup %1849 }
 0x5c2   :  { %1851 = vtanh.f32 %v1165_v43 }
 0x5c7   :  { %v1132_v59 = vpop.f32.mrf.mxu2 }
 0x5c8   :  { %v1852_v60 = vpop.eup %1851  ;;  %v1166_v62 = vmul.f32 %v1132_v59, %v2194_v22 }
 0x5c9   :  { %v1195_v61 = vpack.c.bf16 %v1852_v60, %v2245_v58 }
 0x5ca   :  { %1853 = vtanh.f32 %v1166_v62 }
 0x5cf   :  { %v1134_v39 = vpop.f32.mrf.mxu2 }
 0x5d0   :  { %v1167_v63 = vmul.f32 %v1134_v39, %v2194_v22  ;;  %v1854_v1 = vpop.eup %1853 }
 0x5d2   :  { %1855 = vtanh.f32 %v1167_v63 }
 0x5d7   :  { %v1137_v0 = vpop.f32.mrf.mxu2 }
 0x5d8   :  { %v1856_v4 = vpop.eup %1855  ;;  %v1168_v9 = vmul.f32 %v1137_v0, %v2194_v22 }
 0x5d9   :  { %v1196_v5 = vpack.c.bf16 %v1856_v4, %v1854_v1 }
 0x5da   :  { %1857 = vtanh.f32 %v1168_v9 }
 0x5df   :  { %v1139_v6 = vpop.f32.mrf.mxu2 }
 0x5e0   :  { %v1169_v15 = vmul.f32 %v1139_v6, %v2194_v22  ;;  %v1858_v16 = vpop.eup %1857 }
 0x5e2   :  { %1859 = vtanh.f32 %v1169_v15 }
 0x5e7   :  { %v1142_v17 = vpop.f32.mrf.mxu2 }
 0x5e8   :  { %v1860_v18 = vpop.eup %1859  ;;  %v1170_v10 = vmul.f32 %v1142_v17, %v2194_v22 }
 0x5e9   :  { %v1197_v21 = vpack.c.bf16 %v1860_v18, %v1858_v16 }
 0x5ef   :  { %v1144_v23 = vpop.f32.mrf.mxu2 }
 0x5f0   :  { %v1171_v38 = vmul.f32 %v1144_v23, %v2194_v22 }
 0x5f7   :  { %v1147_v24 = vpop.f32.mrf.mxu2 }
 0x5f8   :  { %v1172_v35 = vmul.f32 %v1147_v24, %v2194_v22 }
 0x5ff   :  { %v1149_v27 = vpop.f32.mrf.mxu2 }
 0x600   :  { %v1173_v12 = vmul.f32 %v1149_v27, %v2194_v22 }
 0x607   :  { %v1152_v28 = vpop.f32.mrf.mxu2 }
 0x608   :  { %v1174_v33 = vmul.f32 %v1152_v28, %v2194_v22 }
 0x60f   :  { %v1154_v19 = vpop.f32.mrf.mxu2 }
 0x610   :  { %v1175_v31 = vmul.f32 %v1154_v19, %v2194_v22 }
 0x617   :  { %v1157_v29 = vpop.f32.mrf.mxu2 }
 0x618   :  { %v1176_v30 = vmul.f32 %v1157_v29, %v2194_v22 }
 0x61a   :  { %1861 = vtanh.f32 %v1176_v30 }
 0x61f   :  { %v1159_v14 = vpop.f32.mrf.mxu2 }
 0x620   :  { %v1177_v11 = vmul.f32 %v1159_v14, %v2194_v22  ;;  %v1862_v3 = vpop.eup %1861 }
 0x622   :  { %1863 = vtanh.f32 %v1177_v11 }
 0x623   :  { %1865 = vtanh.f32 %v1175_v31 }
 0x624   :  { %1867 = vtanh.f32 %v1174_v33 }
 0x625   :  { %1869 = vtanh.f32 %v1173_v12 }
 0x626   :  { %1871 = vtanh.f32 %v1172_v35 }
 0x627   :  { %1873 = vtanh.f32 %v1171_v38 }
 0x628   :  { %v1864_v37 = vpop.eup %1863  ;;  %1875 = vtanh.f32 %v1170_v10 }
 0x629   :  { %v1201_v40 = vpack.c.bf16 %v1864_v37, %v1862_v3  ;;  %v1866_v8 = vpop.eup %1865 }
 0x62a   :  { %v1868_v41 = vpop.eup %1867 }
 0x62b   :  { %1202 = vmatpush.bf16.msra.mxu0 %v1201_v40  ;;  %v1200_v42 = vpack.c.bf16 %v1866_v8, %v1868_v41  ;;  %v1870_v44 = vpop.eup %1869 }
 0x62c   :  { %v1872_v45 = vpop.eup %1871 }
 0x62d   :  { %v1199_v46 = vpack.c.bf16 %v1870_v44, %v1872_v45  ;;  %v1874_v36 = vpop.eup %1873 }
 0x62e   :  { %v1876_v25 = vpop.eup %1875 }
 0x62f   :  { %1203 = vmatpush.bf16.msra.mxu0 %v1200_v42  ;;  %v1198_v47 = vpack.c.bf16 %v1874_v36, %v1876_v25 }
 0x633   :  { %1204 = vmatpush.bf16.msra.mxu0 %v1199_v46 }
 0x637   :  { %1205 = vmatpush.bf16.msra.mxu0 %v1198_v47 }
 0x63b   :  { %1206 = vmatpush.bf16.msra.mxu0 %v1197_v21 }
 0x63f   :  { %1207 = vmatpush.bf16.msra.mxu0 %v1196_v5 }
 0x643   :  { %1208 = vmatpush.bf16.msra.mxu0 %v1195_v61 }
 0x647   :  { %1209 = vmatpush.bf16.msra.mxu0 %v1194_v56 }
 0x648   :  { %v1373_v3 = vpop.trf.xlu0 }
 0x64a   :  { %1210 = vmatmul.bf16.vlgmr.msra.gmra.mxu0 %v2150_v2 }
 0x64b   :  { %1415 = vmatpush.bf16.msrb.mxu0 %v2123_v32 }
 0x658   :  { %v1374_v10 = vpop.trf.xlu0 }
 0x65a   :  { %1746 = vmatmul.msk.bf16.vlgmr.msrb.gmra.mxu0 %vm40_vm1, %v1373_v3 }
 0x668   :  { %v1375_v46 = vpop.trf.xlu0 }
 0x66a   :  { %1747 = vmatmul.msk.bf16.gmra.mxu0 %vm40_vm1, %v1374_v10 }
 0x67a   :  { %1748 = vmatmul.msk.bf16.gmra.mxu0 %vm40_vm1, %v1375_v46 }
 0x6c7   :  { %v1211_v22 = vpop.f32.mrf.mxu0 }
 0x6c8   :  { %v1212_v48 = vadd.f32 %v1211_v22, %v2127_v34 }
 0x6ca   :  { %1737 = vst [vmem:[%s2393_s4 + $0x8] sm:$0xff] %v1212_v48  ;;  %v2269_v50 = vpack.c.bf16 %v1212_v48, %v1212_v48  ;;  %v1376_v48 = vpop.trf.xlu0 }
 0x6cb   :  { %1749 = vmatmul.msk.bf16.gmra.mxu0 %vm40_vm1, %v1376_v48 }
 0x6cc   :  { %1794 = vxpose.binary.xlu1.c.b16.start.end [1/2] (short) %v2269_v50, %v2232_v49, 128 }
 0x6cd   :  { %1515 = vxpose.xlu0.c.b16.start.end [1/1] (short) %v2269_v50, 128 }
 0x6cf   :  { %v1213_v51 = vpop.f32.mrf.mxu0 }
 0x778   :  { %v1795_v26 = vpop.trf.xlu1 }
 0x779   :  { %1719 = vmatmul.msk.bf16.vlgmr.msrb.gmra.mxu3 %vm40_vm1, %v1795_v26 }
 0x780   :  { %v1796_v32 = vpop.trf.xlu1 }
 0x781   :  { %1738 = vmatmul.msk.bf16.vlgmr.msrb.gmra.mxu1 %vm40_vm1, %v1796_v32 }
 0x788   :  { %v1797_v2 = vpop.trf.xlu1 }
 0x789   :  { %1720 = vmatmul.msk.bf16.gmra.mxu3 %vm40_vm1, %v1797_v2 }
 0x790   :  { %v1798_v34 = vpop.trf.xlu1 }
 0x791   :  { %1739 = vmatmul.msk.bf16.gmra.mxu1 %vm40_vm1, %v1798_v34 }
 0x798   :  { %v1799_v52 = vpop.trf.xlu1 }
 0x799   :  { %1721 = vmatmul.msk.bf16.gmra.mxu3 %vm40_vm1, %v1799_v52  ;;  %v1377_v52 = vpop.trf.xlu0 }
 0x79a   :  { %1750 = vmatmul.msk.bf16.gmra.mxu0 %vm40_vm1, %v1377_v52 }
 0x7a0   :  { %v1800_v53 = vpop.trf.xlu1 }
 0x7a1   :  { %1740 = vmatmul.msk.bf16.gmra.mxu1 %vm40_vm1, %v1800_v53 }
 0x7a8   :  { %v1801_v54 = vpop.trf.xlu1 }
 0x7a9   :  { %1722 = vmatmul.msk.bf16.gmra.mxu3 %vm40_vm1, %v1801_v54 }
 0x7b0   :  { %v1802_v7 = vpop.trf.xlu1 }
 0x7b1   :  { %1741 = vmatmul.msk.bf16.gmra.mxu1 %vm40_vm1, %v1802_v7 }
 0x7b8   :  { %v1803_v55 = vpop.trf.xlu1 }
 0x7b9   :  { %1723 = vmatmul.msk.bf16.gmra.mxu3 %vm40_vm1, %v1803_v55 }
 0x7c0   :  { %v1804_v56 = vpop.trf.xlu1 }
 0x7c1   :  { %1742 = vmatmul.msk.bf16.gmra.mxu1 %vm40_vm1, %v1804_v56 }
 0x7c8   :  { %v1805_v13 = vpop.trf.xlu1 }
 0x7c9   :  { %1724 = vmatmul.msk.bf16.gmra.mxu3 %vm40_vm1, %v1805_v13 }
 0x7d0   :  { %v1806_v57 = vpop.trf.xlu1 }
 0x7d1   :  { %1743 = vmatmul.msk.bf16.gmra.mxu1 %vm40_vm1, %v1806_v57 }
 0x7d8   :  { %v1807_v43 = vpop.trf.xlu1 }
 0x7d9   :  { %1725 = vmatmul.msk.bf16.gmra.mxu3 %vm40_vm1, %v1807_v43 }
 0x7e0   :  { %v1808_v58 = vpop.trf.xlu1 }
 0x7e1   :  { %1744 = vmatmul.msk.bf16.gmra.mxu1 %vm40_vm1, %v1808_v58 }
 0x7e8   :  { %v1809_v59 = vpop.trf.xlu1 }
 0x7e9   :  { %1726 = vmatmul.msk.bf16.gmra.mxu3 %vm40_vm1, %v1809_v59 }
 0x7f0   :  { %v1810_v60 = vpop.trf.xlu1 }
 0x7f1   :  { %1745 = vmatmul.msk.bf16.gmra.mxu1 %vm40_vm1, %v1810_v60 }
 0x7fc   :  { %v984_v61 = vpop.f32.mrf.mxu3 }
 0x7fd   :  { %v1024_v9 = vmul.f32 %v984_v61, %v984_v61 }
 0x7fe   :  { %v1269_v62 = vpop.f32.mrf.mxu1 }
 0x7ff   :  { %v1309_v1 = vmul.f32 %v1269_v62, %v1269_v62 }
 0x804   :  { %v986_v39 = vpop.f32.mrf.mxu3 }
 0x805   :  { %v1025_v4 = vmul.f32 %v986_v39, %v986_v39 }
 0x806   :  { %v1271_v63 = vpop.f32.mrf.mxu1 }
 0x807   :  { %v1310_v0 = vmul.f32 %v1271_v63, %v1271_v63  ;;  %v1040_v15 = vadd.f32 %v1025_v4, %v1024_v9 }
 0x809   :  { %v1325_v5 = vadd.f32 %v1310_v0, %v1309_v1 }
 0x80c   :  { %v989_v6 = vpop.f32.mrf.mxu3 }
 0x80d   :  { %v1026_v16 = vmul.f32 %v989_v6, %v989_v6 }
 0x80e   :  { %v1274_v17 = vpop.f32.mrf.mxu1 }
 0x80f   :  { %v1041_v18 = vadd.f32 %v1040_v15, %v1026_v16  ;;  %v1311_v21 = vmul.f32 %v1274_v17, %v1274_v17 }
 0x811   :  { %v1326_v23 = vadd.f32 %v1325_v5, %v1311_v21 }
 0x814   :  { %v991_v24 = vpop.f32.mrf.mxu3 }
 0x815   :  { %v1027_v19 = vmul.f32 %v991_v24, %v991_v24 }
 0x816   :  { %v1276_v27 = vpop.f32.mrf.mxu1 }
 0x817   :  { %v1312_v28 = vmul.f32 %v1276_v27, %v1276_v27  ;;  %v1042_v14 = vadd.f32 %v1041_v18, %v1027_v19 }
 0x819   :  { %v1327_v29 = vadd.f32 %v1326_v23, %v1312_v28 }
 0x81c   :  { %v994_v30 = vpop.f32.mrf.mxu3 }
 0x81d   :  { %v1028_v31 = vmul.f32 %v994_v30, %v994_v30 }
 0x81e   :  { %v1279_v11 = vpop.f32.mrf.mxu1 }
 0x81f   :  { %v1043_v33 = vadd.f32 %v1042_v14, %v1028_v31  ;;  %v1313_v12 = vmul.f32 %v1279_v11, %v1279_v11  ;;  %v1378_v14 = vpop.trf.xlu0 }
 0x820   :  { %1751 = vmatmul.msk.bf16.gmra.mxu0 %vm40_vm1, %v1378_v14 }
 0x821   :  { %v1328_v35 = vadd.f32 %v1327_v29, %v1313_v12 }
 0x824   :  { %v996_v37 = vpop.f32.mrf.mxu3 }
 0x825   :  { %v1029_v34 = vmul.f32 %v996_v37, %v996_v37 }
 0x826   :  { %v1281_v38 = vpop.f32.mrf.mxu1 }
 0x827   :  { %v1314_v53 = vmul.f32 %v1281_v38, %v1281_v38  ;;  %v1044_v7 = vadd.f32 %v1043_v33, %v1029_v34 }
 0x829   :  { %v1329_v57 = vadd.f32 %v1328_v35, %v1314_v53 }
 0x82c   :  { %v999_v40 = vpop.f32.mrf.mxu3 }
 0x82d   :  { %v1030_v54 = vmul.f32 %v999_v40, %v999_v40 }
 0x82e   :  { %v1284_v8 = vpop.f32.mrf.mxu1 }
 0x82f   :  { %v1315_v55 = vmul.f32 %v1284_v8, %v1284_v8  ;;  %v1045_v43 = vadd.f32 %v1044_v7, %v1030_v54 }
 0x831   :  { %v1330_v61 = vadd.f32 %v1329_v57, %v1315_v55 }
 0x834   :  { %v1001_v41 = vpop.f32.mrf.mxu3 }
 0x835   :  { %v1031_v56 = vmul.f32 %v1001_v41, %v1001_v41 }
 0x836   :  { %v1286_v42 = vpop.f32.mrf.mxu1 }
 0x837   :  { %v1316_v58 = vmul.f32 %v1286_v42, %v1286_v42  ;;  %v1046_v62 = vadd.f32 %v1045_v43, %v1031_v56 }
 0x839   :  { %v1331_v1 = vadd.f32 %v1330_v61, %v1316_v58 }
 0x83c   :  { %v1004_v44 = vpop.f32.mrf.mxu3 }
 0x83d   :  { %v1032_v59 = vmul.f32 %v1004_v44, %v1004_v44 }
 0x83e   :  { %v1289_v45 = vpop.f32.mrf.mxu1 }
 0x83f   :  { %v1317_v39 = vmul.f32 %v1289_v45, %v1289_v45  ;;  %v1047_v0 = vadd.f32 %v1046_v62, %v1032_v59 }
 0x841   :  { %v1332_v9 = vadd.f32 %v1331_v1, %v1317_v39 }
 0x844   :  { %v1006_v36 = vpop.f32.mrf.mxu3 }
 0x845   :  { %v1033_v63 = vmul.f32 %v1006_v36, %v1006_v36  ;;  %v1379_v36 = vpop.trf.xlu0 }
 0x846   :  { %v1291_v25 = vpop.f32.mrf.mxu1  ;;  %1752 = vmatmul.msk.bf16.gmra.mxu0 %vm40_vm1, %v1379_v36 }
 0x847   :  { %v1318_v4 = vmul.f32 %v1291_v25, %v1291_v25  ;;  %v1048_v6 = vadd.f32 %v1047_v0, %v1033_v63 }
 0x849   :  { %v1333_v18 = vadd.f32 %v1332_v9, %v1318_v4 }
 0x84c   :  { %v1009_v47 = vpop.f32.mrf.mxu3 }
 0x84d   :  { %v1034_v5 = vmul.f32 %v1009_v47, %v1009_v47  ;;  %v1380_v25 = vpop.trf.xlu0  ;;  %v2298_v47 = vpop.f32.mrf.mxu0 }
 0x84e   :  { %v1294_v22 = vpop.f32.mrf.mxu1 }
 0x84f   :  { %v1319_v15 = vmul.f32 %v1294_v22, %v1294_v22  ;;  %v1049_v21 = vadd.f32 %v1048_v6, %v1034_v5 }
 0x851   :  { %v1334_v28 = vadd.f32 %v1333_v18, %v1319_v15 }
 0x854   :  { %v1011_v51 = vpop.f32.mrf.mxu3 }
 0x855   :  { %v1035_v16 = vmul.f32 %v1011_v51, %v1011_v51  ;;  %v2300_v22 = vpop.f32.mrf.mxu0 }
 0x856   :  { %v1296_v26 = vpop.f32.mrf.mxu1  ;;  %1753 = vmatmul.msk.bf16.gmra.mxu0 %vm40_vm1, %v1380_v25 }
 0x857   :  { %v1320_v23 = vmul.f32 %v1296_v26, %v1296_v26  ;;  %v1050_v19 = vadd.f32 %v1049_v21, %v1035_v16 }
 0x859   :  { %v1335_v31 = vadd.f32 %v1334_v28, %v1320_v23 }
 0x85c   :  { %v1014_v32 = vpop.f32.mrf.mxu3 }
 0x85d   :  { %v1036_v24 = vmul.f32 %v1014_v32, %v1014_v32  ;;  %v2302_v48 = vpop.f32.mrf.mxu0 }
 0x85e   :  { %v1299_v2 = vpop.f32.mrf.mxu1 }
 0x85f   :  { %v1321_v29 = vmul.f32 %v1299_v2, %v1299_v2  ;;  %v1051_v11 = vadd.f32 %v1050_v19, %v1036_v24 }
 0x861   :  { %v1336_v35 = vadd.f32 %v1335_v31, %v1321_v29 }
 0x864   :  { %v1016_v13 = vpop.f32.mrf.mxu3 }
 0x865   :  { %v1037_v30 = vmul.f32 %v1016_v13, %v1016_v13  ;;  %v2304_v51 = vpop.f32.mrf.mxu0 }
 0x866   :  { %v1301_v60 = vpop.f32.mrf.mxu1 }
 0x867   :  { %v1322_v33 = vmul.f32 %v1301_v60, %v1301_v60  ;;  %v1052_v3 = vadd.f32 %v1051_v11, %v1037_v30 }
 0x869   :  { %v1337_v40 = vadd.f32 %v1336_v35, %v1322_v33 }
 0x86c   :  { %v1019_v17 = vpop.f32.mrf.mxu3 }
 0x86d   :  { %v1038_v12 = vmul.f32 %v1019_v17, %v1019_v17  ;;  %v2306_v26 = vpop.f32.mrf.mxu0 }
 0x86e   :  { %v1304_v27 = vpop.f32.mrf.mxu1 }
 0x86f   :  { %v1323_v37 = vmul.f32 %v1304_v27, %v1304_v27  ;;  %v1053_v8 = vadd.f32 %v1052_v3, %v1038_v12 }
 0x871   :  { %v1338_v42 = vadd.f32 %v1337_v40, %v1323_v37 }
 0x874   :  { %v1021_v38 = vpop.f32.mrf.mxu3 }
 0x875   :  { %v1039_v10 = vmul.f32 %v1021_v38, %v1021_v38  ;;  %v2308_v32 = vpop.f32.mrf.mxu0 }
 0x876   :  { %v1306_v41 = vpop.f32.mrf.mxu1 }
 0x877   :  { %v1324_v44 = vmul.f32 %v1306_v41, %v1306_v41  ;;  %v1054_v45 = vadd.f32 %v1053_v8, %v1039_v10 }
 0x879   :  { %1055 = vadd.xlane.f32.xlu1 %v1054_v45  ;;  %v1339_v46 = vadd.f32 %v1338_v42, %v1324_v44 }
 0x87b   :  { %1340 = vadd.xlane.f32.xlu2 %v1339_v46 }
 0x87d   :  { %v1432_v43 = vpop.f32.mrf.mxu0 }
 0x885   :  { %v1434_v62 = vpop.f32.mrf.mxu0 }
 0x88d   :  { %v1437_v39 = vpop.f32.mrf.mxu0 }
 0x895   :  { %v1439_v63 = vpop.f32.mrf.mxu0 }
 0x89d   :  { %v1442_v1 = vpop.f32.mrf.mxu0 }
 0x8a5   :  { %v1444_v0 = vpop.f32.mrf.mxu0 }
 0x8c3   :  { %v1447_v6 = vpop.f32.mrf.mxu0 }
 0x8cb   :  { %v1449_v17 = vpop.f32.mrf.mxu0 }
 0x8d3   :  { %v1452_v24 = vpop.f32.mrf.mxu0 }
 0x8db   :  { %v1454_v29 = vpop.f32.mrf.mxu0 }
 0x8ec   :  { %v1056_v2 = vpop.xlane.xlu1 %1055 }
 0x8ed   :  { %v1057_v34 = vrot.slane %v1056_v2, 4 }
 0x8ee   :  { %v1341_v52 = vpop.xlane.xlu2 %1340 }
 0x8ef   :  { %v1058_v53 = vadd.f32 %v1057_v34, %v1056_v2  ;;  %v1342_v54 = vrot.slane %v1341_v52, 4 }
 0x8f1   :  { %v1059_v7 = vrot.slane %v1058_v53, 2  ;;  %v1343_v55 = vadd.f32 %v1342_v54, %v1341_v52 }
 0x8f3   :  { %v1060_v56 = vadd.f32 %v1059_v7, %v1058_v53  ;;  %v1344_v13 = vrot.slane %v1343_v55, 2 }
 0x8f5   :  { %v1345_v57 = vadd.f32 %v1344_v13, %v1343_v55  ;;  %v1061_v58 = vrot.slane %v1060_v56, 1 }
 0x8f7   :  { %v1062_v59 = vadd.f32 %v1061_v58, %v1060_v56  ;;  %v1346_v60 = vrot.slane %v1345_v57, 1 }
 0x8f9   :  { %1769 = vpush %v1062_v59  ;;  %v1347_v61 = vadd.f32 %v1346_v60, %v1345_v57 }
 0x8fb   :  { %1771 = vpush %v1347_v61 }
 0x92a   :  { %s1770_s4 = spop %1769 }
 0x92b   :  { %v1064_v4 = vstv %s1770_s4 }
 0x92c   :  { %s1772_s25 = spop %1771 }
 0x92d   :  { %v1349_v5 = vstv %s1772_s25 }
 0x92e   :  { %v1350_v9 = vadd.f32 %v1349_v5, %v1064_v4 }
 0x930   :  { %1877 = vrsqrt.f32 %v1350_v9  ;;  %vm1357_vm9 = vweird.f32 %v1350_v9 }
 0x936   :  { %v1878_v15 = vpop.eup %1877 }
 0x937   :  { %v1352_v16 = vmul.f32 %v1878_v15, %v1350_v9  ;;  %vm1358_vm8 = vweird.f32 %v1878_v15 }
 0x938   :  { %vm1359_vm10 = vmor %vm1357_vm9, %vm1358_vm8 }
 0x939   :  { %v1353_v18 = vmul.f32 %v1878_v15, %v1352_v16 }
 0x93b   :  { %v1354_v21 = vmul.f32 0.5, %v1353_v18 }
 0x93d   :  { %v1355_v23 = vsub.f32 1.5, %v1354_v21 }
 0x93f   :  { %v1356_v27 = vmul.f32 %v1878_v15, %v1355_v23 }
 0x941   :  { %v2310_v28 = vsel %vm1359_vm10, %v1878_v15, %v1356_v27 }
 0x942   :  { %v1471_v19 = vmul.f32 %v1452_v24, %v2310_v28  ;;  %v1472_v30 = vmul.f32 %v1454_v29, %v2310_v28  ;;  %v1469_v14 = vmul.f32 %v1447_v6, %v2310_v28  ;;  %v1470_v31 = vmul.f32 %v1449_v17, %v2310_v28 }
 0x943   :  { %v1467_v11 = vmul.f32 %v1442_v1, %v2310_v28  ;;  %v1468_v33 = vmul.f32 %v1444_v0, %v2310_v28  ;;  %v1465_v35 = vmul.f32 %v1437_v39, %v2310_v28  ;;  %v1466_v37 = vmul.f32 %v1439_v63, %v2310_v28  ;;  %v1523_v39 = vpop.trf.xlu0 }
 0x944   :  { %1879 = vtanh.f32 %v1471_v19  ;;  %v1463_v10 = vmul.f32 %v1432_v43, %v2310_v28  ;;  %v1464_v41 = vmul.f32 %v1434_v62, %v2310_v28  ;;  %v1461_v46 = vmul.f32 %v2306_v26, %v2310_v28 }
 0x945   :  { %1881 = vtanh.f32 %v1472_v30  ;;  %v1462_v36 = vmul.f32 %v2308_v32, %v2310_v28  ;;  %v1459_v52 = vmul.f32 %v2302_v48, %v2310_v28  ;;  %v1460_v53 = vmul.f32 %v2304_v51, %v2310_v28 }
 0x946   :  { %1883 = vtanh.f32 %v1469_v14  ;;  %v1457_v55 = vmul.f32 %v2298_v47, %v2310_v28  ;;  %v1458_v32 = vmul.f32 %v2300_v22, %v2310_v28  ;;  %v2337_v47 = vld [vmem:[%s2392_s5 + $0x8] sm:$0xff] }
 0x947   :  { %1885 = vtanh.f32 %v1470_v31  ;;  %v1514_v22 = vpack.c.bf16 %v2337_v47, %v2337_v47 }
 0x948   :  { %1887 = vtanh.f32 %v1467_v11 }
 0x949   :  { %1889 = vtanh.f32 %v1468_v33  ;;  %v1556_v62 = vsel %vm44_vm0, %v1514_v22, 0 }
 0x94a   :  { %v1880_v12 = vpop.eup %1879  ;;  %1891 = vtanh.f32 %v1465_v35 }
 0x94b   :  { %v1882_v3 = vpop.eup %1881  ;;  %1893 = vtanh.f32 %v1466_v37  ;;  %v1524_v63 = vpop.trf.xlu0 }
 0x94c   :  { %v1884_v38 = vpop.eup %1883  ;;  %v1496_v40 = vpack.c.bf16 %v1882_v3, %v1880_v12  ;;  %1895 = vtanh.f32 %v1463_v10 }
 0x94d   :  { %v1886_v8 = vpop.eup %1885  ;;  %1897 = vtanh.f32 %v1464_v41 }
 0x94e   :  { %1497 = vmatpush.bf16.msra.mxu3 %v1496_v40  ;;  %v1888_v42 = vpop.eup %1887  ;;  %v1495_v44 = vpack.c.bf16 %v1886_v8, %v1884_v38  ;;  %1899 = vtanh.f32 %v1461_v46 }
 0x94f   :  { %v1890_v45 = vpop.eup %1889  ;;  %1901 = vtanh.f32 %v1462_v36 }
 0x950   :  { %v1892_v25 = vpop.eup %1891  ;;  %v1494_v2 = vpack.c.bf16 %v1890_v45, %v1888_v42  ;;  %1903 = vtanh.f32 %v1459_v52 }
 0x951   :  { %v1894_v34 = vpop.eup %1893  ;;  %1905 = vtanh.f32 %v1460_v53 }
 0x952   :  { %1498 = vmatpush.bf16.msra.mxu3 %v1495_v44  ;;  %v1896_v54 = vpop.eup %1895  ;;  %v1493_v26 = vpack.c.bf16 %v1894_v34, %v1892_v25  ;;  %1907 = vtanh.f32 %v1457_v55 }
 0x953   :  { %v1898_v7 = vpop.eup %1897  ;;  %1909 = vtanh.f32 %v1458_v32  ;;  %v1525_v1 = vpop.trf.xlu0 }
 0x954   :  { %v1900_v56 = vpop.eup %1899  ;;  %v1492_v48 = vpack.c.bf16 %v1898_v7, %v1896_v54 }
 0x955   :  { %v1902_v13 = vpop.eup %1901 }
 0x956   :  { %1499 = vmatpush.bf16.msra.mxu3 %v1494_v2  ;;  %v1904_v51 = vpop.eup %1903  ;;  %v1491_v57 = vpack.c.bf16 %v1902_v13, %v1900_v56 }
 0x957   :  { %v1906_v43 = vpop.eup %1905 }
 0x958   :  { %v1908_v58 = vpop.eup %1907  ;;  %v1490_v59 = vpack.c.bf16 %v1906_v43, %v1904_v51 }
 0x959   :  { %v1910_v60 = vpop.eup %1909 }
 0x95a   :  { %1500 = vmatpush.bf16.msra.mxu3 %v1493_v26  ;;  %v1489_v61 = vpack.c.bf16 %v1910_v60, %v1908_v58 }
 0x95b   :  { %v1526_v0 = vpop.trf.xlu0 }
 0x95e   :  { %1501 = vmatpush.bf16.msra.mxu3 %v1492_v48 }
 0x962   :  { %1502 = vmatpush.bf16.msra.mxu3 %v1491_v57 }
 0x963   :  { %v1527_v4 = vpop.trf.xlu0 }
 0x966   :  { %1503 = vmatpush.bf16.msra.mxu3 %v1490_v59 }
 0x96a   :  { %1504 = vmatpush.bf16.msra.mxu3 %v1489_v61 }
 0x96b   :  { %v1528_v5 = vpop.trf.xlu0 }
 0x96d   :  { %1505 = vmatmul.bf16.vlgmr.msra.gmra.mxu3 %v2232_v49 }
 0x96e   :  { %1565 = vmatpush.bf16.msrb.mxu3 %v1556_v62 }
 0x973   :  { %v1529_v9 = vpop.trf.xlu0 }
 0x97b   :  { %v1530_v49 = vpop.trf.xlu0 }
 0x97d   :  { %1756 = vmatmul.msk.bf16.vlgmr.msrb.gmra.mxu3 %vm40_vm1, %v1523_v39 }
 0x98d   :  { %1757 = vmatmul.msk.bf16.gmra.mxu3 %vm40_vm1, %v1524_v63 }
 0x99d   :  { %1758 = vmatmul.msk.bf16.gmra.mxu3 %vm40_vm1, %v1525_v1 }
 0x9ad   :  { %1759 = vmatmul.msk.bf16.gmra.mxu3 %vm40_vm1, %v1526_v0 }
 0x9bd   :  { %1760 = vmatmul.msk.bf16.gmra.mxu3 %vm40_vm1, %v1527_v4 }
 0x9cd   :  { %1761 = vmatmul.msk.bf16.gmra.mxu3 %vm40_vm1, %v1528_v5 }
 0x9dd   :  { %1762 = vmatmul.msk.bf16.gmra.mxu3 %vm40_vm1, %v1529_v9 }
 0x9ed   :  { %1763 = vmatmul.msk.bf16.gmra.mxu3 %vm40_vm1, %v1530_v49 }
 0x9f0   :  { %v1506_v6 = vpop.f32.mrf.mxu3 }
 0x9f1   :  { %v1507_v15 = vadd.f32 %v1506_v6, %v2113_v20 }
 0x9f3   :  { %1510 = vst [vmem:[%s2392_s5] sm:$0xff] %v1507_v15 }
 0x9f8   :  { %v1508_v16 = vpop.f32.mrf.mxu3 }
 0xa00   :  { %v1567_v17 = vpop.f32.mrf.mxu3 }
 0xa01   :  { %v1607_v18 = vmul.f32 %v1567_v17, %v2310_v28 }
 0xa03   :  { %1911 = vtanh.f32 %v1607_v18 }
 0xa08   :  { %v1569_v21 = vpop.f32.mrf.mxu3 }
 0xa09   :  { %v1608_v23 = vmul.f32 %v1569_v21, %v2310_v28  ;;  %v2357_v24 = vpop.eup %1911 }
 0xa0b   :  { %1913 = vtanh.f32 %v1608_v23 }
 0xa10   :  { %v1572_v27 = vpop.f32.mrf.mxu3 }
 0xa11   :  { %v2359_v19 = vpop.eup %1913  ;;  %v1609_v29 = vmul.f32 %v1572_v27, %v2310_v28 }
 0xa12   :  { %v1639_v20 = vpack.c.bf16 %v2359_v19, %v2357_v24 }
 0xa13   :  { %1915 = vtanh.f32 %v1609_v29 }
 0xa18   :  { %v1574_v30 = vpop.f32.mrf.mxu3 }
 0xa19   :  { %v1610_v14 = vmul.f32 %v1574_v30, %v2310_v28  ;;  %v2365_v31 = vpop.eup %1915 }
 0xa1b   :  { %1917 = vtanh.f32 %v1610_v14 }
 0xa20   :  { %v1577_v11 = vpop.f32.mrf.mxu3 }
 0xa21   :  { %v1918_v33 = vpop.eup %1917  ;;  %v1611_v35 = vmul.f32 %v1577_v11, %v2310_v28 }
 0xa22   :  { %v1640_v12 = vpack.c.bf16 %v1918_v33, %v2365_v31 }
 0xa23   :  { %1919 = vtanh.f32 %v1611_v35 }
 0xa28   :  { %v1579_v3 = vpop.f32.mrf.mxu3 }
 0xa29   :  { %v1612_v37 = vmul.f32 %v1579_v3, %v2310_v28  ;;  %v1920_v38 = vpop.eup %1919 }
 0xa2b   :  { %1921 = vtanh.f32 %v1612_v37 }
 0xa30   :  { %v1582_v40 = vpop.f32.mrf.mxu3 }
 0xa31   :  { %v1922_v8 = vpop.eup %1921  ;;  %v1613_v41 = vmul.f32 %v1582_v40, %v2310_v28 }
 0xa32   :  { %v1641_v10 = vpack.c.bf16 %v1922_v8, %v1920_v38 }
 0xa33   :  { %1923 = vtanh.f32 %v1613_v41 }
 0xa38   :  { %v1584_v42 = vpop.f32.mrf.mxu3 }
 0xa39   :  { %v1614_v44 = vmul.f32 %v1584_v42, %v2310_v28  ;;  %v1924_v45 = vpop.eup %1923 }
 0xa3b   :  { %1925 = vtanh.f32 %v1614_v44 }
 0xa40   :  { %v1587_v46 = vpop.f32.mrf.mxu3 }
 0xa41   :  { %v1926_v36 = vpop.eup %1925  ;;  %v1615_v22 = vmul.f32 %v1587_v46, %v2310_v28 }
 0xa42   :  { %v1642_v25 = vpack.c.bf16 %v1926_v36, %v1924_v45 }
 0xa48   :  { %v1589_v2 = vpop.f32.mrf.mxu3 }
 0xa49   :  { %v1616_v58 = vmul.f32 %v1589_v2, %v2310_v28 }
 0xa50   :  { %v1592_v34 = vpop.f32.mrf.mxu3 }
 0xa51   :  { %v1617_v51 = vmul.f32 %v1592_v34, %v2310_v28 }
 0xa58   :  { %v1594_v52 = vpop.f32.mrf.mxu3 }
 0xa59   :  { %v1618_v13 = vmul.f32 %v1594_v52, %v2310_v28 }
 0xa60   :  { %v1597_v53 = vpop.f32.mrf.mxu3 }
 0xa61   :  { %v1619_v48 = vmul.f32 %v1597_v53, %v2310_v28 }
 0xa68   :  { %v1599_v54 = vpop.f32.mrf.mxu3 }
 0xa69   :  { %v1620_v32 = vmul.f32 %v1599_v54, %v2310_v28 }
 0xa70   :  { %v1602_v26 = vpop.f32.mrf.mxu3 }
 0xa71   :  { %v1621_v7 = vmul.f32 %v1602_v26, %v2310_v28 }
 0xa73   :  { %1927 = vtanh.f32 %v1621_v7 }
 0xa78   :  { %v1604_v55 = vpop.f32.mrf.mxu3 }
 0xa79   :  { %v1622_v56 = vmul.f32 %v1604_v55, %v2310_v28  ;;  %v1928_v57 = vpop.eup %1927 }
 0xa7b   :  { %1929 = vtanh.f32 %v1622_v56 }
 0xa7c   :  { %1931 = vtanh.f32 %v1620_v32 }
 0xa7d   :  { %1933 = vtanh.f32 %v1619_v48 }
 0xa7e   :  { %1935 = vtanh.f32 %v1618_v13 }
 0xa7f   :  { %1937 = vtanh.f32 %v1617_v51 }
 0xa80   :  { %1939 = vtanh.f32 %v1616_v58 }
 0xa81   :  { %v1930_v43 = vpop.eup %1929  ;;  %1941 = vtanh.f32 %v1615_v22 }
 0xa82   :  { %v1646_v59 = vpack.c.bf16 %v1930_v43, %v1928_v57  ;;  %v1932_v60 = vpop.eup %1931 }
 0xa83   :  { %v1934_v61 = vpop.eup %1933 }
 0xa84   :  { %1647 = vmatpush.bf16.msrb.mxu2 %v1646_v59  ;;  %v1645_v62 = vpack.c.bf16 %v1932_v60, %v1934_v61  ;;  %v1936_v39 = vpop.eup %1935 }
 0xa85   :  { %v1938_v63 = vpop.eup %1937 }
 0xa86   :  { %v1644_v1 = vpack.c.bf16 %v1936_v39, %v1938_v63  ;;  %v1940_v0 = vpop.eup %1939 }
 0xa87   :  { %v1942_v4 = vpop.eup %1941 }
 0xa88   :  { %1648 = vmatpush.bf16.msrb.mxu2 %v1645_v62  ;;  %v1643_v5 = vpack.c.bf16 %v1940_v0, %v1942_v4 }
 0xa8c   :  { %1649 = vmatpush.bf16.msrb.mxu2 %v1644_v1 }
 0xa90   :  { %1650 = vmatpush.bf16.msrb.mxu2 %v1643_v5 }
 0xa94   :  { %1651 = vmatpush.bf16.msrb.mxu2 %v1642_v25 }
 0xa98   :  { %1652 = vmatpush.bf16.msrb.mxu2 %v1641_v10 }
 0xa9c   :  { %1653 = vmatpush.bf16.msrb.mxu2 %v1640_v12 }
 0xaa0   :  { %1654 = vmatpush.bf16.msrb.mxu2 %v1639_v20 }
 0xaa3   :  { %1655 = vmatmul.bf16.vlgmr.msrb.gmra.mxu2 %v2269_v50 }
 0xb26   :  { %v1656_v28 = vpop.f32.mrf.mxu2 }
 0xb27   :  { %v1657_v9 = vadd.f32 %v2337_v47, %v1656_v28 }
 0xb29   :  { %1764 = vst [vmem:[%s2392_s5 + $0x8] sm:$0xff] %v1657_v9 }
 0xb2e   :  { %v1658_v49 = vpop.f32.mrf.mxu2 }

</bundles_post_ra>
